<compile_context>
chip_gen: v7x
topology: tpu7x:2x2x1
jax: 0.10.0
libtpu: 0.0.40
codegen_flags: <defaults>
</compile_context>

<pallas_src>
import jax
import jax.numpy as jnp
from jax.experimental import pallas as pl
from jax.experimental.pallas import tpu as pltpu

LANE = 128
_NEG_BIG = -1e30  # finite "-inf" used to pad extra vocab lanes of the table


def _round_up(x, m):
    return (x + m - 1) // m * m


def _pick_block_rows(n_rows_total, v_pad,
                     vmem_block_budget=16 * 1024 * 1024, max_rows=64):
    """Rows per grid step: multiple of 8, capped by VMEM budget & unroll size."""
    # ~3 live (R, V_pad) f32 blocks: gather scratch + 2x double-buffered out.
    by_vmem = max(8, vmem_block_budget // (3 * v_pad * 4))
    r = min(max_rows, by_vmem, _round_up(n_rows_total, 8))
    return max(8, (r // 8) * 8)


def _gather_rows(ids_ref, table_ref, buf, sem, base, n_rows):
    """Issue n_rows concurrent HBM row-gather DMAs, then wait for all."""
    for r in range(n_rows):
        tok = ids_ref[base + r]
        pltpu.make_async_copy(
            table_ref.at[pl.ds(tok, 1)],      # (1, V_pad) table row in HBM
            buf.at[pl.ds(r, 1)],              # (1, V_pad) slot in VMEM scratch
            sem.at[r],
        ).start()
    for r in range(n_rows):
        pltpu.make_async_copy(
            table_ref.at[pl.ds(0, 1)],        # dummy src (size only) for wait
            buf.at[pl.ds(r, 1)],
            sem.at[r],
        ).wait()


def _logits_kernel(ids_ref, table_ref, logits_ref, buf, sem):
    # ids_ref   : (N_pad,) int32 SMEM (scalar prefetch)
    # table_ref : (V, V_pad) f32 HBM (memory_space=pl.ANY)
    # logits_ref: (R, V_pad) f32 output block
    # buf       : (R, V_pad) f32 VMEM gather scratch, sem: (R,) DMA sems
    n_rows = logits_ref.shape[0]
    _gather_rows(ids_ref, table_ref, buf, sem, pl.program_id(0) * n_rows, n_rows)
    logits_ref[...] = buf[...]


def _logits_loss_kernel(ids_ref, tgt_ref, table_ref, logits_ref, nll_ref, buf, sem):
    # tgt_ref : (R, 1) int32 targets block (VMEM)
    # nll_ref : (R, 1) f32 per-row negative log-likelihood output block
    n_rows = logits_ref.shape[0]
    _gather_rows(ids_ref, table_ref, buf, sem, pl.program_id(0) * n_rows, n_rows)

    rows = buf[...]                                    # (R, V_pad) f32
    logits_ref[...] = rows

    # Row-wise logsumexp; padded vocab lanes hold _NEG_BIG -> exp underflows
    # to 0, so no explicit mask is needed.
    m = jnp.max(rows, axis=-1, keepdims=True)          # (R, 1)
    lse = m + jnp.log(jnp.sum(jnp.exp(rows - m), axis=-1, keepdims=True))

    # Target logit per row via a lane select (no (R, V) one-hot matmul).
    col = jax.lax.broadcasted_iota(jnp.int32, rows.shape, 1)
    tgt = tgt_ref[...]                                 # (R, 1) int32, always < V
    tgt_logit = jnp.sum(jnp.where(col == tgt, rows, 0.0), axis=-1, keepdims=True)

    nll_ref[...] = lse - tgt_logit


def bigram_lm_forward(idx, table_padded, vocab_size, targets=None):
    """Forward pass of BigramLM given a pre-padded (V, V_pad) table."""
    B, T = idx.shape
    V = vocab_size
    V_pad = table_padded.shape[1]
    N = B * T
    R = _pick_block_rows(N, V_pad)
    N_pad = _round_up(N, R)
    nblk = N_pad // R

    ids = idx.reshape(N).astype(jnp.int32)
    if N_pad != N:
        ids = jnp.pad(ids, (0, N_pad - N))             # pad rows gather row 0

    table_spec = pl.BlockSpec(memory_space=pl.ANY)     # raw HBM ref, manual DMA
    logits_spec = pl.BlockSpec((R, V_pad), lambda i, ids_ref: (i, 0))
    scratch = [pltpu.VMEM((R, V_pad), jnp.float32),
               pltpu.SemaphoreType.DMA((R,))]
    cparams = pltpu.CompilerParams(
        dimension_semantics=("parallel",),             # no cross-step state
        vmem_limit_bytes=48 * 1024 * 1024)

    if targets is None:
        logits_p = pl.pallas_call(
            _logits_kernel,
            out_shape=jax.ShapeDtypeStruct((N_pad, V_pad), jnp.float32),
            grid_spec=pltpu.PrefetchScalarGridSpec(
                num_scalar_prefetch=1,
                grid=(nblk,),
                in_specs=[table_spec],
                out_specs=logits_spec,
                scratch_shapes=scratch),
            compiler_params=cparams,
        )(ids, table_padded)
        logits = logits_p if (N_pad == N and V_pad == V) else logits_p[:N, :V]
        return logits.reshape(B, T, V), None

    tgts = targets.reshape(N, 1).astype(jnp.int32)
    if N_pad != N:
        tgts = jnp.pad(tgts, ((0, N_pad - N), (0, 0)))
    tgt_spec = pl.BlockSpec((R, 1), lambda i, ids_ref: (i, 0))
    nll_spec = pl.BlockSpec((R, 1), lambda i, ids_ref: (i, 0))

    logits_p, nll = pl.pallas_call(
        _logits_loss_kernel,
        out_shape=(jax.ShapeDtypeStruct((N_pad, V_pad), jnp.float32),
                   jax.ShapeDtypeStruct((N_pad, 1), jnp.float32)),
        grid_spec=pltpu.PrefetchScalarGridSpec(
            num_scalar_prefetch=1,
            grid=(nblk,),
            in_specs=[tgt_spec, table_spec],
            out_specs=(logits_spec, nll_spec),
            scratch_shapes=scratch),
        compiler_params=cparams,
    )(ids, tgts, table_padded)

    loss = jnp.mean(nll[:N, 0])                        # tiny final reduction
    logits = logits_p if (N_pad == N and V_pad == V) else logits_p[:N, :V]
    # PyTorch returns the (B*T, C)-viewed logits when targets are given.
    return logits, loss


class BigramLM:
    """JAX/Pallas port of the PyTorch BigramLM (forward pass only)."""

    def __init__(self, table):
        table = jnp.asarray(table, jnp.float32)
        v = table.shape[0]
        v_pad = _round_up(v, LANE)
        if v_pad != v:
            # Pad vocab (lane) dim ONCE at init with a large negative value so
            # the padded lanes vanish from the in-kernel logsumexp (exp -> 0)
            # and every store is lane-dense.
            table = jnp.pad(table, ((0, 0), (0, v_pad - v)),
                            constant_values=_NEG_BIG)
        self.vocab_size = v
        self.v_pad = v_pad
        self.table = table                              # (V, V_pad) f32 in HBM

    def __call__(self, idx, targets=None):
        return bigram_lm_forward(idx, self.table, self.vocab_size, targets)


def _reference(idx, table, targets):
    logits = table[idx]                                 # (B, T, V)
    B, T, V = logits.shape
    lf = logits.reshape(B * T, V)
    tf = targets.reshape(B * T)
    lse = jax.scipy.special.logsumexp(lf, axis=-1)
    loss = jnp.mean(lse - lf[jnp.arange(B * T), tf])
    return lf, loss


if __name__ == "__main__":
    B, T, vocab_size = 2, 8, 32

    key = jax.random.PRNGKey(0)
    k_table, k_idx, k_tgt = jax.random.split(key, 3)
    # nn.Embedding default init: N(0, 1)
    table = jax.random.normal(k_table, (vocab_size, vocab_size), dtype=jnp.float32)
    idx = jax.random.randint(k_idx, (B, T), 0, vocab_size, dtype=jnp.int32)
    targets = jax.random.randint(k_tgt, (B, T), 0, vocab_size, dtype=jnp.int32)

    model = BigramLM(table)

    # targets=None path (logits only, shaped (B, T, V))
    logits_only, loss_none = model(idx, None)
    jax.block_until_ready(logits_only)
    assert logits_only.shape == (B, T, vocab_size) and loss_none is None
    assert jnp.allclose(logits_only, table[idx], atol=1e-6)

    # full path (flattened logits + mean cross-entropy loss)
    logits, loss = model(idx, targets)
    jax.block_until_ready((logits, loss))

    ref_logits, ref_loss = _reference(idx, table, targets)
    assert logits.shape == (B * T, vocab_size)
    assert jnp.allclose(logits, ref_logits, atol=1e-5)
    assert jnp.allclose(loss, ref_loss, atol=1e-5)

    print("KERNEL_OK")
</pallas_src>

<mosaic_0001>
module attributes {stable_mosaic.version = 11 : i64} {
  func.func @_logits_kernel(%arg0: i32, %arg1: memref<16xi32, #tpu.memory_space<smem>>, %arg2: memref<32x128xf32, #tpu.memory_space<any>>, %arg3: memref<16x128xf32, #tpu.memory_space<vmem>>, %arg4: memref<16x128xf32, #tpu.memory_space<vmem>>, %arg5: memref<16x!tpu.dma_semaphore, #tpu.memory_space<semaphore_mem>>) attributes {dimension_semantics = [#tpu.dimension_semantics<parallel>], iteration_bounds = array<i64: 1>, scalar_prefetch = 1 : i64, scratch_operands = 2 : i64, tpu.core_type = #tpu.core_type<tc>, window_params = [{}, {transform_indices = @transform_1, window_bounds = array<i64: 16, 128>}]} {
    %c16_i32 = arith.constant 16 : i32
    %0 = arith.muli %arg0, %c16_i32 : i32
    %c0_i32 = arith.constant 0 : i32
    %1 = arith.addi %0, %c0_i32 : i32
    %2 = arith.index_cast %1 : i32 to index
    %3 = memref.load %arg1[%2] : memref<16xi32, #tpu.memory_space<smem>>
    %c0_i32_0 = arith.constant 0 : i32
    %c0_i32_1 = arith.constant 0 : i32
    %4 = tpu.memref_slice %arg2[%3, %c0_i32_1] : memref<32x128xf32, #tpu.memory_space<any>> -> memref<1x128xf32, #tpu.memory_space<any>>
    %c0_i32_2 = arith.constant 0 : i32
    %c0_i32_3 = arith.constant 0 : i32
    %5 = tpu.memref_slice %arg4[%c0_i32_2, %c0_i32_3] : memref<16x128xf32, #tpu.memory_space<vmem>> -> memref<1x128xf32, #tpu.memory_space<vmem>>
    %6 = tpu.memref_slice %arg5[%c0_i32_0] : memref<16x!tpu.dma_semaphore, #tpu.memory_space<semaphore_mem>> -> memref<1x!tpu.dma_semaphore, #tpu.memory_space<semaphore_mem>>
    %7 = tpu.memref_squeeze %6 : memref<1x!tpu.dma_semaphore, #tpu.memory_space<semaphore_mem>> -> memref<!tpu.dma_semaphore, #tpu.memory_space<semaphore_mem>>
    tpu.enqueue_dma source(%4 : memref<1x128xf32, #tpu.memory_space<any>>) target(%5 : memref<1x128xf32, #tpu.memory_space<vmem>>) target_semaphore(%7 : memref<!tpu.dma_semaphore, #tpu.memory_space<semaphore_mem>>)
    %c1_i32 = arith.constant 1 : i32
    %8 = arith.addi %0, %c1_i32 : i32
    %9 = arith.index_cast %8 : i32 to index
    %10 = memref.load %arg1[%9] : memref<16xi32, #tpu.memory_space<smem>>
    %c1_i32_4 = arith.constant 1 : i32
    %c0_i32_5 = arith.constant 0 : i32
    %11 = tpu.memref_slice %arg2[%10, %c0_i32_5] : memref<32x128xf32, #tpu.memory_space<any>> -> memref<1x128xf32, #tpu.memory_space<any>>
    %c1_i32_6 = arith.constant 1 : i32
    %c0_i32_7 = arith.constant 0 : i32
    %12 = tpu.memref_slice %arg4[%c1_i32_6, %c0_i32_7] : memref<16x128xf32, #tpu.memory_space<vmem>> -> memref<1x128xf32, #tpu.memory_space<vmem>>
    %13 = tpu.memref_slice %arg5[%c1_i32_4] : memref<16x!tpu.dma_semaphore, #tpu.memory_space<semaphore_mem>> -> memref<1x!tpu.dma_semaphore, #tpu.memory_space<semaphore_mem>>
    %14 = tpu.memref_squeeze %13 : memref<1x!tpu.dma_semaphore, #tpu.memory_space<semaphore_mem>> -> memref<!tpu.dma_semaphore, #tpu.memory_space<semaphore_mem>>
    tpu.enqueue_dma source(%11 : memref<1x128xf32, #tpu.memory_space<any>>) target(%12 : memref<1x128xf32, #tpu.memory_space<vmem>>) target_semaphore(%14 : memref<!tpu.dma_semaphore, #tpu.memory_space<semaphore_mem>>)
    %c2_i32 = arith.constant 2 : i32
    %15 = arith.addi %0, %c2_i32 : i32
    %16 = arith.index_cast %15 : i32 to index
    %17 = memref.load %arg1[%16] : memref<16xi32, #tpu.memory_space<smem>>
    %c2_i32_8 = arith.constant 2 : i32
    %c0_i32_9 = arith.constant 0 : i32
    %18 = tpu.memref_slice %arg2[%17, %c0_i32_9] : memref<32x128xf32, #tpu.memory_space<any>> -> memref<1x128xf32, #tpu.memory_space<any>>
    %c2_i32_10 = arith.constant 2 : i32
    %c0_i32_11 = arith.constant 0 : i32
    %19 = tpu.memref_slice %arg4[%c2_i32_10, %c0_i32_11] : memref<16x128xf32, #tpu.memory_space<vmem>> -> memref<1x128xf32, #tpu.memory_space<vmem>>
    %20 = tpu.memref_slice %arg5[%c2_i32_8] : memref<16x!tpu.dma_semaphore, #tpu.memory_space<semaphore_mem>> -> memref<1x!tpu.dma_semaphore, #tpu.memory_space<semaphore_mem>>
    %21 = tpu.memref_squeeze %20 : memref<1x!tpu.dma_semaphore, #tpu.memory_space<semaphore_mem>> -> memref<!tpu.dma_semaphore, #tpu.memory_space<semaphore_mem>>
    tpu.enqueue_dma source(%18 : memref<1x128xf32, #tpu.memory_space<any>>) target(%19 : memref<1x128xf32, #tpu.memory_space<vmem>>) target_semaphore(%21 : memref<!tpu.dma_semaphore, #tpu.memory_space<semaphore_mem>>)
    %c3_i32 = arith.constant 3 : i32
    %22 = arith.addi %0, %c3_i32 : i32
    %23 = arith.index_cast %22 : i32 to index
    %24 = memref.load %arg1[%23] : memref<16xi32, #tpu.memory_space<smem>>
    %c3_i32_12 = arith.constant 3 : i32
    %c0_i32_13 = arith.constant 0 : i32
    %25 = tpu.memref_slice %arg2[%24, %c0_i32_13] : memref<32x128xf32, #tpu.memory_space<any>> -> memref<1x128xf32, #tpu.memory_space<any>>
    %c3_i32_14 = arith.constant 3 : i32
    %c0_i32_15 = arith.constant 0 : i32
    %26 = tpu.memref_slice %arg4[%c3_i32_14, %c0_i32_15] : memref<16x128xf32, #tpu.memory_space<vmem>> -> memref<1x128xf32, #tpu.memory_space<vmem>>
    %27 = tpu.memref_slice %arg5[%c3_i32_12] : memref<16x!tpu.dma_semaphore, #tpu.memory_space<semaphore_mem>> -> memref<1x!tpu.dma_semaphore, #tpu.memory_space<semaphore_mem>>
    %28 = tpu.memref_squeeze %27 : memref<1x!tpu.dma_semaphore, #tpu.memory_space<semaphore_mem>> -> memref<!tpu.dma_semaphore, #tpu.memory_space<semaphore_mem>>
    tpu.enqueue_dma source(%25 : memref<1x128xf32, #tpu.memory_space<any>>) target(%26 : memref<1x128xf32, #tpu.memory_space<vmem>>) target_semaphore(%28 : memref<!tpu.dma_semaphore, #tpu.memory_space<semaphore_mem>>)
    %c4_i32 = arith.constant 4 : i32
    %29 = arith.addi %0, %c4_i32 : i32
    %30 = arith.index_cast %29 : i32 to index
    %31 = memref.load %arg1[%30] : memref<16xi32, #tpu.memory_space<smem>>
    %c4_i32_16 = arith.constant 4 : i32
    %c0_i32_17 = arith.constant 0 : i32
    %32 = tpu.memref_slice %arg2[%31, %c0_i32_17] : memref<32x128xf32, #tpu.memory_space<any>> -> memref<1x128xf32, #tpu.memory_space<any>>
    %c4_i32_18 = arith.constant 4 : i32
    %c0_i32_19 = arith.constant 0 : i32
    %33 = tpu.memref_slice %arg4[%c4_i32_18, %c0_i32_19] : memref<16x128xf32, #tpu.memory_space<vmem>> -> memref<1x128xf32, #tpu.memory_space<vmem>>
    %34 = tpu.memref_slice %arg5[%c4_i32_16] : memref<16x!tpu.dma_semaphore, #tpu.memory_space<semaphore_mem>> -> memref<1x!tpu.dma_semaphore, #tpu.memory_space<semaphore_mem>>
    %35 = tpu.memref_squeeze %34 : memref<1x!tpu.dma_semaphore, #tpu.memory_space<semaphore_mem>> -> memref<!tpu.dma_semaphore, #tpu.memory_space<semaphore_mem>>
    tpu.enqueue_dma source(%32 : memref<1x128xf32, #tpu.memory_space<any>>) target(%33 : memref<1x128xf32, #tpu.memory_space<vmem>>) target_semaphore(%35 : memref<!tpu.dma_semaphore, #tpu.memory_space<semaphore_mem>>)
    %c5_i32 = arith.constant 5 : i32
    %36 = arith.addi %0, %c5_i32 : i32
    %37 = arith.index_cast %36 : i32 to index
    %38 = memref.load %arg1[%37] : memref<16xi32, #tpu.memory_space<smem>>
    %c5_i32_20 = arith.constant 5 : i32
    %c0_i32_21 = arith.constant 0 : i32
    %39 = tpu.memref_slice %arg2[%38, %c0_i32_21] : memref<32x128xf32, #tpu.memory_space<any>> -> memref<1x128xf32, #tpu.memory_space<any>>
    %c5_i32_22 = arith.constant 5 : i32
    %c0_i32_23 = arith.constant 0 : i32
    %40 = tpu.memref_slice %arg4[%c5_i32_22, %c0_i32_23] : memref<16x128xf32, #tpu.memory_space<vmem>> -> memref<1x128xf32, #tpu.memory_space<vmem>>
    %41 = tpu.memref_slice %arg5[%c5_i32_20] : memref<16x!tpu.dma_semaphore, #tpu.memory_space<semaphore_mem>> -> memref<1x!tpu.dma_semaphore, #tpu.memory_space<semaphore_mem>>
    %42 = tpu.memref_squeeze %41 : memref<1x!tpu.dma_semaphore, #tpu.memory_space<semaphore_mem>> -> memref<!tpu.dma_semaphore, #tpu.memory_space<semaphore_mem>>
    tpu.enqueue_dma source(%39 : memref<1x128xf32, #tpu.memory_space<any>>) target(%40 : memref<1x128xf32, #tpu.memory_space<vmem>>) target_semaphore(%42 : memref<!tpu.dma_semaphore, #tpu.memory_space<semaphore_mem>>)
    %c6_i32 = arith.constant 6 : i32
    %43 = arith.addi %0, %c6_i32 : i32
    %44 = arith.index_cast %43 : i32 to index
    %45 = memref.load %arg1[%44] : memref<16xi32, #tpu.memory_space<smem>>
    %c6_i32_24 = arith.constant 6 : i32
    %c0_i32_25 = arith.constant 0 : i32
    %46 = tpu.memref_slice %arg2[%45, %c0_i32_25] : memref<32x128xf32, #tpu.memory_space<any>> -> memref<1x128xf32, #tpu.memory_space<any>>
    %c6_i32_26 = arith.constant 6 : i32
    %c0_i32_27 = arith.constant 0 : i32
    %47 = tpu.memref_slice %arg4[%c6_i32_26, %c0_i32_27] : memref<16x128xf32, #tpu.memory_space<vmem>> -> memref<1x128xf32, #tpu.memory_space<vmem>>
    %48 = tpu.memref_slice %arg5[%c6_i32_24] : memref<16x!tpu.dma_semaphore, #tpu.memory_space<semaphore_mem>> -> memref<1x!tpu.dma_semaphore, #tpu.memory_space<semaphore_mem>>
    %49 = tpu.memref_squeeze %48 : memref<1x!tpu.dma_semaphore, #tpu.memory_space<semaphore_mem>> -> memref<!tpu.dma_semaphore, #tpu.memory_space<semaphore_mem>>
    tpu.enqueue_dma source(%46 : memref<1x128xf32, #tpu.memory_space<any>>) target(%47 : memref<1x128xf32, #tpu.memory_space<vmem>>) target_semaphore(%49 : memref<!tpu.dma_semaphore, #tpu.memory_space<semaphore_mem>>)
    %c7_i32 = arith.constant 7 : i32
    %50 = arith.addi %0, %c7_i32 : i32
    %51 = arith.index_cast %50 : i32 to index
    %52 = memref.load %arg1[%51] : memref<16xi32, #tpu.memory_space<smem>>
    %c7_i32_28 = arith.constant 7 : i32
    %c0_i32_29 = arith.constant 0 : i32
    %53 = tpu.memref_slice %arg2[%52, %c0_i32_29] : memref<32x128xf32, #tpu.memory_space<any>> -> memref<1x128xf32, #tpu.memory_space<any>>
    %c7_i32_30 = arith.constant 7 : i32
    %c0_i32_31 = arith.constant 0 : i32
    %54 = tpu.memref_slice %arg4[%c7_i32_30, %c0_i32_31] : memref<16x128xf32, #tpu.memory_space<vmem>> -> memref<1x128xf32, #tpu.memory_space<vmem>>
    %55 = tpu.memref_slice %arg5[%c7_i32_28] : memref<16x!tpu.dma_semaphore, #tpu.memory_space<semaphore_mem>> -> memref<1x!tpu.dma_semaphore, #tpu.memory_space<semaphore_mem>>
    %56 = tpu.memref_squeeze %55 : memref<1x!tpu.dma_semaphore, #tpu.memory_space<semaphore_mem>> -> memref<!tpu.dma_semaphore, #tpu.memory_space<semaphore_mem>>
    tpu.enqueue_dma source(%53 : memref<1x128xf32, #tpu.memory_space<any>>) target(%54 : memref<1x128xf32, #tpu.memory_space<vmem>>) target_semaphore(%56 : memref<!tpu.dma_semaphore, #tpu.memory_space<semaphore_mem>>)
    %c8_i32 = arith.constant 8 : i32
    %57 = arith.addi %0, %c8_i32 : i32
    %58 = arith.index_cast %57 : i32 to index
    %59 = memref.load %arg1[%58] : memref<16xi32, #tpu.memory_space<smem>>
    %c8_i32_32 = arith.constant 8 : i32
    %c0_i32_33 = arith.constant 0 : i32
    %60 = tpu.memref_slice %arg2[%59, %c0_i32_33] : memref<32x128xf32, #tpu.memory_space<any>> -> memref<1x128xf32, #tpu.memory_space<any>>
    %c8_i32_34 = arith.constant 8 : i32
    %c0_i32_35 = arith.constant 0 : i32
    %61 = tpu.memref_slice %arg4[%c8_i32_34, %c0_i32_35] : memref<16x128xf32, #tpu.memory_space<vmem>> -> memref<1x128xf32, #tpu.memory_space<vmem>>
    %62 = tpu.memref_slice %arg5[%c8_i32_32] : memref<16x!tpu.dma_semaphore, #tpu.memory_space<semaphore_mem>> -> memref<1x!tpu.dma_semaphore, #tpu.memory_space<semaphore_mem>>
    %63 = tpu.memref_squeeze %62 : memref<1x!tpu.dma_semaphore, #tpu.memory_space<semaphore_mem>> -> memref<!tpu.dma_semaphore, #tpu.memory_space<semaphore_mem>>
    tpu.enqueue_dma source(%60 : memref<1x128xf32, #tpu.memory_space<any>>) target(%61 : memref<1x128xf32, #tpu.memory_space<vmem>>) target_semaphore(%63 : memref<!tpu.dma_semaphore, #tpu.memory_space<semaphore_mem>>)
    %c9_i32 = arith.constant 9 : i32
    %64 = arith.addi %0, %c9_i32 : i32
    %65 = arith.index_cast %64 : i32 to index
    %66 = memref.load %arg1[%65] : memref<16xi32, #tpu.memory_space<smem>>
    %c9_i32_36 = arith.constant 9 : i32
    %c0_i32_37 = arith.constant 0 : i32
    %67 = tpu.memref_slice %arg2[%66, %c0_i32_37] : memref<32x128xf32, #tpu.memory_space<any>> -> memref<1x128xf32, #tpu.memory_space<any>>
    %c9_i32_38 = arith.constant 9 : i32
    %c0_i32_39 = arith.constant 0 : i32
    %68 = tpu.memref_slice %arg4[%c9_i32_38, %c0_i32_39] : memref<16x128xf32, #tpu.memory_space<vmem>> -> memref<1x128xf32, #tpu.memory_space<vmem>>
    %69 = tpu.memref_slice %arg5[%c9_i32_36] : memref<16x!tpu.dma_semaphore, #tpu.memory_space<semaphore_mem>> -> memref<1x!tpu.dma_semaphore, #tpu.memory_space<semaphore_mem>>
    %70 = tpu.memref_squeeze %69 : memref<1x!tpu.dma_semaphore, #tpu.memory_space<semaphore_mem>> -> memref<!tpu.dma_semaphore, #tpu.memory_space<semaphore_mem>>
    tpu.enqueue_dma source(%67 : memref<1x128xf32, #tpu.memory_space<any>>) target(%68 : memref<1x128xf32, #tpu.memory_space<vmem>>) target_semaphore(%70 : memref<!tpu.dma_semaphore, #tpu.memory_space<semaphore_mem>>)
    %c10_i32 = arith.constant 10 : i32
    %71 = arith.addi %0, %c10_i32 : i32
    %72 = arith.index_cast %71 : i32 to index
    %73 = memref.load %arg1[%72] : memref<16xi32, #tpu.memory_space<smem>>
    %c10_i32_40 = arith.constant 10 : i32
    %c0_i32_41 = arith.constant 0 : i32
    %74 = tpu.memref_slice %arg2[%73, %c0_i32_41] : memref<32x128xf32, #tpu.memory_space<any>> -> memref<1x128xf32, #tpu.memory_space<any>>
    %c10_i32_42 = arith.constant 10 : i32
    %c0_i32_43 = arith.constant 0 : i32
    %75 = tpu.memref_slice %arg4[%c10_i32_42, %c0_i32_43] : memref<16x128xf32, #tpu.memory_space<vmem>> -> memref<1x128xf32, #tpu.memory_space<vmem>>
    %76 = tpu.memref_slice %arg5[%c10_i32_40] : memref<16x!tpu.dma_semaphore, #tpu.memory_space<semaphore_mem>> -> memref<1x!tpu.dma_semaphore, #tpu.memory_space<semaphore_mem>>
    %77 = tpu.memref_squeeze %76 : memref<1x!tpu.dma_semaphore, #tpu.memory_space<semaphore_mem>> -> memref<!tpu.dma_semaphore, #tpu.memory_space<semaphore_mem>>
    tpu.enqueue_dma source(%74 : memref<1x128xf32, #tpu.memory_space<any>>) target(%75 : memref<1x128xf32, #tpu.memory_space<vmem>>) target_semaphore(%77 : memref<!tpu.dma_semaphore, #tpu.memory_space<semaphore_mem>>)
    %c11_i32 = arith.constant 11 : i32
    %78 = arith.addi %0, %c11_i32 : i32
    %79 = arith.index_cast %78 : i32 to index
    %80 = memref.load %arg1[%79] : memref<16xi32, #tpu.memory_space<smem>>
    %c11_i32_44 = arith.constant 11 : i32
    %c0_i32_45 = arith.constant 0 : i32
    %81 = tpu.memref_slice %arg2[%80, %c0_i32_45] : memref<32x128xf32, #tpu.memory_space<any>> -> memref<1x128xf32, #tpu.memory_space<any>>
    %c11_i32_46 = arith.constant 11 : i32
    %c0_i32_47 = arith.constant 0 : i32
    %82 = tpu.memref_slice %arg4[%c11_i32_46, %c0_i32_47] : memref<16x128xf32, #tpu.memory_space<vmem>> -> memref<1x128xf32, #tpu.memory_space<vmem>>
    %83 = tpu.memref_slice %arg5[%c11_i32_44] : memref<16x!tpu.dma_semaphore, #tpu.memory_space<semaphore_mem>> -> memref<1x!tpu.dma_semaphore, #tpu.memory_space<semaphore_mem>>
    %84 = tpu.memref_squeeze %83 : memref<1x!tpu.dma_semaphore, #tpu.memory_space<semaphore_mem>> -> memref<!tpu.dma_semaphore, #tpu.memory_space<semaphore_mem>>
    tpu.enqueue_dma source(%81 : memref<1x128xf32, #tpu.memory_space<any>>) target(%82 : memref<1x128xf32, #tpu.memory_space<vmem>>) target_semaphore(%84 : memref<!tpu.dma_semaphore, #tpu.memory_space<semaphore_mem>>)
    %c12_i32 = arith.constant 12 : i32
    %85 = arith.addi %0, %c12_i32 : i32
    %86 = arith.index_cast %85 : i32 to index
    %87 = memref.load %arg1[%86] : memref<16xi32, #tpu.memory_space<smem>>
    %c12_i32_48 = arith.constant 12 : i32
    %c0_i32_49 = arith.constant 0 : i32
    %88 = tpu.memref_slice %arg2[%87, %c0_i32_49] : memref<32x128xf32, #tpu.memory_space<any>> -> memref<1x128xf32, #tpu.memory_space<any>>
    %c12_i32_50 = arith.constant 12 : i32
    %c0_i32_51 = arith.constant 0 : i32
    %89 = tpu.memref_slice %arg4[%c12_i32_50, %c0_i32_51] : memref<16x128xf32, #tpu.memory_space<vmem>> -> memref<1x128xf32, #tpu.memory_space<vmem>>
    %90 = tpu.memref_slice %arg5[%c12_i32_48] : memref<16x!tpu.dma_semaphore, #tpu.memory_space<semaphore_mem>> -> memref<1x!tpu.dma_semaphore, #tpu.memory_space<semaphore_mem>>
    %91 = tpu.memref_squeeze %90 : memref<1x!tpu.dma_semaphore, #tpu.memory_space<semaphore_mem>> -> memref<!tpu.dma_semaphore, #tpu.memory_space<semaphore_mem>>
    tpu.enqueue_dma source(%88 : memref<1x128xf32, #tpu.memory_space<any>>) target(%89 : memref<1x128xf32, #tpu.memory_space<vmem>>) target_semaphore(%91 : memref<!tpu.dma_semaphore, #tpu.memory_space<semaphore_mem>>)
    %c13_i32 = arith.constant 13 : i32
    %92 = arith.addi %0, %c13_i32 : i32
    %93 = arith.index_cast %92 : i32 to index
    %94 = memref.load %arg1[%93] : memref<16xi32, #tpu.memory_space<smem>>
    %c13_i32_52 = arith.constant 13 : i32
    %c0_i32_53 = arith.constant 0 : i32
    %95 = tpu.memref_slice %arg2[%94, %c0_i32_53] : memref<32x128xf32, #tpu.memory_space<any>> -> memref<1x128xf32, #tpu.memory_space<any>>
    %c13_i32_54 = arith.constant 13 : i32
    %c0_i32_55 = arith.constant 0 : i32
    %96 = tpu.memref_slice %arg4[%c13_i32_54, %c0_i32_55] : memref<16x128xf32, #tpu.memory_space<vmem>> -> memref<1x128xf32, #tpu.memory_space<vmem>>
    %97 = tpu.memref_slice %arg5[%c13_i32_52] : memref<16x!tpu.dma_semaphore, #tpu.memory_space<semaphore_mem>> -> memref<1x!tpu.dma_semaphore, #tpu.memory_space<semaphore_mem>>
    %98 = tpu.memref_squeeze %97 : memref<1x!tpu.dma_semaphore, #tpu.memory_space<semaphore_mem>> -> memref<!tpu.dma_semaphore, #tpu.memory_space<semaphore_mem>>
    tpu.enqueue_dma source(%95 : memref<1x128xf32, #tpu.memory_space<any>>) target(%96 : memref<1x128xf32, #tpu.memory_space<vmem>>) target_semaphore(%98 : memref<!tpu.dma_semaphore, #tpu.memory_space<semaphore_mem>>)
    %c14_i32 = arith.constant 14 : i32
    %99 = arith.addi %0, %c14_i32 : i32
    %100 = arith.index_cast %99 : i32 to index
    %101 = memref.load %arg1[%100] : memref<16xi32, #tpu.memory_space<smem>>
    %c14_i32_56 = arith.constant 14 : i32
    %c0_i32_57 = arith.constant 0 : i32
    %102 = tpu.memref_slice %arg2[%101, %c0_i32_57] : memref<32x128xf32, #tpu.memory_space<any>> -> memref<1x128xf32, #tpu.memory_space<any>>
    %c14_i32_58 = arith.constant 14 : i32
    %c0_i32_59 = arith.constant 0 : i32
    %103 = tpu.memref_slice %arg4[%c14_i32_58, %c0_i32_59] : memref<16x128xf32, #tpu.memory_space<vmem>> -> memref<1x128xf32, #tpu.memory_space<vmem>>
    %104 = tpu.memref_slice %arg5[%c14_i32_56] : memref<16x!tpu.dma_semaphore, #tpu.memory_space<semaphore_mem>> -> memref<1x!tpu.dma_semaphore, #tpu.memory_space<semaphore_mem>>
    %105 = tpu.memref_squeeze %104 : memref<1x!tpu.dma_semaphore, #tpu.memory_space<semaphore_mem>> -> memref<!tpu.dma_semaphore, #tpu.memory_space<semaphore_mem>>
    tpu.enqueue_dma source(%102 : memref<1x128xf32, #tpu.memory_space<any>>) target(%103 : memref<1x128xf32, #tpu.memory_space<vmem>>) target_semaphore(%105 : memref<!tpu.dma_semaphore, #tpu.memory_space<semaphore_mem>>)
    %c15_i32 = arith.constant 15 : i32
    %106 = arith.addi %0, %c15_i32 : i32
    %107 = arith.index_cast %106 : i32 to index
    %108 = memref.load %arg1[%107] : memref<16xi32, #tpu.memory_space<smem>>
    %c15_i32_60 = arith.constant 15 : i32
    %c0_i32_61 = arith.constant 0 : i32
    %109 = tpu.memref_slice %arg2[%108, %c0_i32_61] : memref<32x128xf32, #tpu.memory_space<any>> -> memref<1x128xf32, #tpu.memory_space<any>>
    %c15_i32_62 = arith.constant 15 : i32
    %c0_i32_63 = arith.constant 0 : i32
    %110 = tpu.memref_slice %arg4[%c15_i32_62, %c0_i32_63] : memref<16x128xf32, #tpu.memory_space<vmem>> -> memref<1x128xf32, #tpu.memory_space<vmem>>
    %111 = tpu.memref_slice %arg5[%c15_i32_60] : memref<16x!tpu.dma_semaphore, #tpu.memory_space<semaphore_mem>> -> memref<1x!tpu.dma_semaphore, #tpu.memory_space<semaphore_mem>>
    %112 = tpu.memref_squeeze %111 : memref<1x!tpu.dma_semaphore, #tpu.memory_space<semaphore_mem>> -> memref<!tpu.dma_semaphore, #tpu.memory_space<semaphore_mem>>
    tpu.enqueue_dma source(%109 : memref<1x128xf32, #tpu.memory_space<any>>) target(%110 : memref<1x128xf32, #tpu.memory_space<vmem>>) target_semaphore(%112 : memref<!tpu.dma_semaphore, #tpu.memory_space<semaphore_mem>>)
    %c0_i32_64 = arith.constant 0 : i32
    %c0_i32_65 = arith.constant 0 : i32
    %c0_i32_66 = arith.constant 0 : i32
    %113 = tpu.memref_slice %arg2[%c0_i32_65, %c0_i32_66] : memref<32x128xf32, #tpu.memory_space<any>> -> memref<1x128xf32, #tpu.memory_space<any>>
    %c0_i32_67 = arith.constant 0 : i32
    %c0_i32_68 = arith.constant 0 : i32
    %114 = tpu.memref_slice %arg4[%c0_i32_67, %c0_i32_68] : memref<16x128xf32, #tpu.memory_space<vmem>> -> memref<1x128xf32, #tpu.memory_space<vmem>>
    %115 = tpu.memref_slice %arg5[%c0_i32_64] : memref<16x!tpu.dma_semaphore, #tpu.memory_space<semaphore_mem>> -> memref<1x!tpu.dma_semaphore, #tpu.memory_space<semaphore_mem>>
    %116 = tpu.memref_squeeze %115 : memref<1x!tpu.dma_semaphore, #tpu.memory_space<semaphore_mem>> -> memref<!tpu.dma_semaphore, #tpu.memory_space<semaphore_mem>>
    tpu.wait_dma2 semaphore(%116 : memref<!tpu.dma_semaphore, #tpu.memory_space<semaphore_mem>>) src(%113 : memref<1x128xf32, #tpu.memory_space<any>>) dst(%114 : memref<1x128xf32, #tpu.memory_space<vmem>>)
    %c1_i32_69 = arith.constant 1 : i32
    %c0_i32_70 = arith.constant 0 : i32
    %c0_i32_71 = arith.constant 0 : i32
    %117 = tpu.memref_slice %arg2[%c0_i32_70, %c0_i32_71] : memref<32x128xf32, #tpu.memory_space<any>> -> memref<1x128xf32, #tpu.memory_space<any>>
    %c1_i32_72 = arith.constant 1 : i32
    %c0_i32_73 = arith.constant 0 : i32
    %118 = tpu.memref_slice %arg4[%c1_i32_72, %c0_i32_73] : memref<16x128xf32, #tpu.memory_space<vmem>> -> memref<1x128xf32, #tpu.memory_space<vmem>>
    %119 = tpu.memref_slice %arg5[%c1_i32_69] : memref<16x!tpu.dma_semaphore, #tpu.memory_space<semaphore_mem>> -> memref<1x!tpu.dma_semaphore, #tpu.memory_space<semaphore_mem>>
    %120 = tpu.memref_squeeze %119 : memref<1x!tpu.dma_semaphore, #tpu.memory_space<semaphore_mem>> -> memref<!tpu.dma_semaphore, #tpu.memory_space<semaphore_mem>>
    tpu.wait_dma2 semaphore(%120 : memref<!tpu.dma_semaphore, #tpu.memory_space<semaphore_mem>>) src(%117 : memref<1x128xf32, #tpu.memory_space<any>>) dst(%118 : memref<1x128xf32, #tpu.memory_space<vmem>>)
    %c2_i32_74 = arith.constant 2 : i32
    %c0_i32_75 = arith.constant 0 : i32
    %c0_i32_76 = arith.constant 0 : i32
    %121 = tpu.memref_slice %arg2[%c0_i32_75, %c0_i32_76] : memref<32x128xf32, #tpu.memory_space<any>> -> memref<1x128xf32, #tpu.memory_space<any>>
    %c2_i32_77 = arith.constant 2 : i32
    %c0_i32_78 = arith.constant 0 : i32
    %122 = tpu.memref_slice %arg4[%c2_i32_77, %c0_i32_78] : memref<16x128xf32, #tpu.memory_space<vmem>> -> memref<1x128xf32, #tpu.memory_space<vmem>>
    %123 = tpu.memref_slice %arg5[%c2_i32_74] : memref<16x!tpu.dma_semaphore, #tpu.memory_space<semaphore_mem>> -> memref<1x!tpu.dma_semaphore, #tpu.memory_space<semaphore_mem>>
    %124 = tpu.memref_squeeze %123 : memref<1x!tpu.dma_semaphore, #tpu.memory_space<semaphore_mem>> -> memref<!tpu.dma_semaphore, #tpu.memory_space<semaphore_mem>>
    tpu.wait_dma2 semaphore(%124 : memref<!tpu.dma_semaphore, #tpu.memory_space<semaphore_mem>>) src(%121 : memref<1x128xf32, #tpu.memory_space<any>>) dst(%122 : memref<1x128xf32, #tpu.memory_space<vmem>>)
    %c3_i32_79 = arith.constant 3 : i32
    %c0_i32_80 = arith.constant 0 : i32
    %c0_i32_81 = arith.constant 0 : i32
    %125 = tpu.memref_slice %arg2[%c0_i32_80, %c0_i32_81] : memref<32x128xf32, #tpu.memory_space<any>> -> memref<1x128xf32, #tpu.memory_space<any>>
    %c3_i32_82 = arith.constant 3 : i32
    %c0_i32_83 = arith.constant 0 : i32
    %126 = tpu.memref_slice %arg4[%c3_i32_82, %c0_i32_83] : memref<16x128xf32, #tpu.memory_space<vmem>> -> memref<1x128xf32, #tpu.memory_space<vmem>>
    %127 = tpu.memref_slice %arg5[%c3_i32_79] : memref<16x!tpu.dma_semaphore, #tpu.memory_space<semaphore_mem>> -> memref<1x!tpu.dma_semaphore, #tpu.memory_space<semaphore_mem>>
    %128 = tpu.memref_squeeze %127 : memref<1x!tpu.dma_semaphore, #tpu.memory_space<semaphore_mem>> -> memref<!tpu.dma_semaphore, #tpu.memory_space<semaphore_mem>>
    tpu.wait_dma2 semaphore(%128 : memref<!tpu.dma_semaphore, #tpu.memory_space<semaphore_mem>>) src(%125 : memref<1x128xf32, #tpu.memory_space<any>>) dst(%126 : memref<1x128xf32, #tpu.memory_space<vmem>>)
    %c4_i32_84 = arith.constant 4 : i32
    %c0_i32_85 = arith.constant 0 : i32
    %c0_i32_86 = arith.constant 0 : i32
    %129 = tpu.memref_slice %arg2[%c0_i32_85, %c0_i32_86] : memref<32x128xf32, #tpu.memory_space<any>> -> memref<1x128xf32, #tpu.memory_space<any>>
    %c4_i32_87 = arith.constant 4 : i32
    %c0_i32_88 = arith.constant 0 : i32
    %130 = tpu.memref_slice %arg4[%c4_i32_87, %c0_i32_88] : memref<16x128xf32, #tpu.memory_space<vmem>> -> memref<1x128xf32, #tpu.memory_space<vmem>>
    %131 = tpu.memref_slice %arg5[%c4_i32_84] : memref<16x!tpu.dma_semaphore, #tpu.memory_space<semaphore_mem>> -> memref<1x!tpu.dma_semaphore, #tpu.memory_space<semaphore_mem>>
    %132 = tpu.memref_squeeze %131 : memref<1x!tpu.dma_semaphore, #tpu.memory_space<semaphore_mem>> -> memref<!tpu.dma_semaphore, #tpu.memory_space<semaphore_mem>>
    tpu.wait_dma2 semaphore(%132 : memref<!tpu.dma_semaphore, #tpu.memory_space<semaphore_mem>>) src(%129 : memref<1x128xf32, #tpu.memory_space<any>>) dst(%130 : memref<1x128xf32, #tpu.memory_space<vmem>>)
    %c5_i32_89 = arith.constant 5 : i32
    %c0_i32_90 = arith.constant 0 : i32
    %c0_i32_91 = arith.constant 0 : i32
    %133 = tpu.memref_slice %arg2[%c0_i32_90, %c0_i32_91] : memref<32x128xf32, #tpu.memory_space<any>> -> memref<1x128xf32, #tpu.memory_space<any>>
    %c5_i32_92 = arith.constant 5 : i32
    %c0_i32_93 = arith.constant 0 : i32
    %134 = tpu.memref_slice %arg4[%c5_i32_92, %c0_i32_93] : memref<16x128xf32, #tpu.memory_space<vmem>> -> memref<1x128xf32, #tpu.memory_space<vmem>>
    %135 = tpu.memref_slice %arg5[%c5_i32_89] : memref<16x!tpu.dma_semaphore, #tpu.memory_space<semaphore_mem>> -> memref<1x!tpu.dma_semaphore, #tpu.memory_space<semaphore_mem>>
    %136 = tpu.memref_squeeze %135 : memref<1x!tpu.dma_semaphore, #tpu.memory_space<semaphore_mem>> -> memref<!tpu.dma_semaphore, #tpu.memory_space<semaphore_mem>>
    tpu.wait_dma2 semaphore(%136 : memref<!tpu.dma_semaphore, #tpu.memory_space<semaphore_mem>>) src(%133 : memref<1x128xf32, #tpu.memory_space<any>>) dst(%134 : memref<1x128xf32, #tpu.memory_space<vmem>>)
    %c6_i32_94 = arith.constant 6 : i32
    %c0_i32_95 = arith.constant 0 : i32
    %c0_i32_96 = arith.constant 0 : i32
    %137 = tpu.memref_slice %arg2[%c0_i32_95, %c0_i32_96] : memref<32x128xf32, #tpu.memory_space<any>> -> memref<1x128xf32, #tpu.memory_space<any>>
    %c6_i32_97 = arith.constant 6 : i32
    %c0_i32_98 = arith.constant 0 : i32
    %138 = tpu.memref_slice %arg4[%c6_i32_97, %c0_i32_98] : memref<16x128xf32, #tpu.memory_space<vmem>> -> memref<1x128xf32, #tpu.memory_space<vmem>>
    %139 = tpu.memref_slice %arg5[%c6_i32_94] : memref<16x!tpu.dma_semaphore, #tpu.memory_space<semaphore_mem>> -> memref<1x!tpu.dma_semaphore, #tpu.memory_space<semaphore_mem>>
    %140 = tpu.memref_squeeze %139 : memref<1x!tpu.dma_semaphore, #tpu.memory_space<semaphore_mem>> -> memref<!tpu.dma_semaphore, #tpu.memory_space<semaphore_mem>>
    tpu.wait_dma2 semaphore(%140 : memref<!tpu.dma_semaphore, #tpu.memory_space<semaphore_mem>>) src(%137 : memref<1x128xf32, #tpu.memory_space<any>>) dst(%138 : memref<1x128xf32, #tpu.memory_space<vmem>>)
    %c7_i32_99 = arith.constant 7 : i32
    %c0_i32_100 = arith.constant 0 : i32
    %c0_i32_101 = arith.constant 0 : i32
    %141 = tpu.memref_slice %arg2[%c0_i32_100, %c0_i32_101] : memref<32x128xf32, #tpu.memory_space<any>> -> memref<1x128xf32, #tpu.memory_space<any>>
    %c7_i32_102 = arith.constant 7 : i32
    %c0_i32_103 = arith.constant 0 : i32
    %142 = tpu.memref_slice %arg4[%c7_i32_102, %c0_i32_103] : memref<16x128xf32, #tpu.memory_space<vmem>> -> memref<1x128xf32, #tpu.memory_space<vmem>>
    %143 = tpu.memref_slice %arg5[%c7_i32_99] : memref<16x!tpu.dma_semaphore, #tpu.memory_space<semaphore_mem>> -> memref<1x!tpu.dma_semaphore, #tpu.memory_space<semaphore_mem>>
    %144 = tpu.memref_squeeze %143 : memref<1x!tpu.dma_semaphore, #tpu.memory_space<semaphore_mem>> -> memref<!tpu.dma_semaphore, #tpu.memory_space<semaphore_mem>>
    tpu.wait_dma2 semaphore(%144 : memref<!tpu.dma_semaphore, #tpu.memory_space<semaphore_mem>>) src(%141 : memref<1x128xf32, #tpu.memory_space<any>>) dst(%142 : memref<1x128xf32, #tpu.memory_space<vmem>>)
    %c8_i32_104 = arith.constant 8 : i32
    %c0_i32_105 = arith.constant 0 : i32
    %c0_i32_106 = arith.constant 0 : i32
    %145 = tpu.memref_slice %arg2[%c0_i32_105, %c0_i32_106] : memref<32x128xf32, #tpu.memory_space<any>> -> memref<1x128xf32, #tpu.memory_space<any>>
    %c8_i32_107 = arith.constant 8 : i32
    %c0_i32_108 = arith.constant 0 : i32
    %146 = tpu.memref_slice %arg4[%c8_i32_107, %c0_i32_108] : memref<16x128xf32, #tpu.memory_space<vmem>> -> memref<1x128xf32, #tpu.memory_space<vmem>>
    %147 = tpu.memref_slice %arg5[%c8_i32_104] : memref<16x!tpu.dma_semaphore, #tpu.memory_space<semaphore_mem>> -> memref<1x!tpu.dma_semaphore, #tpu.memory_space<semaphore_mem>>
    %148 = tpu.memref_squeeze %147 : memref<1x!tpu.dma_semaphore, #tpu.memory_space<semaphore_mem>> -> memref<!tpu.dma_semaphore, #tpu.memory_space<semaphore_mem>>
    tpu.wait_dma2 semaphore(%148 : memref<!tpu.dma_semaphore, #tpu.memory_space<semaphore_mem>>) src(%145 : memref<1x128xf32, #tpu.memory_space<any>>) dst(%146 : memref<1x128xf32, #tpu.memory_space<vmem>>)
    %c9_i32_109 = arith.constant 9 : i32
    %c0_i32_110 = arith.constant 0 : i32
    %c0_i32_111 = arith.constant 0 : i32
    %149 = tpu.memref_slice %arg2[%c0_i32_110, %c0_i32_111] : memref<32x128xf32, #tpu.memory_space<any>> -> memref<1x128xf32, #tpu.memory_space<any>>
    %c9_i32_112 = arith.constant 9 : i32
    %c0_i32_113 = arith.constant 0 : i32
    %150 = tpu.memref_slice %arg4[%c9_i32_112, %c0_i32_113] : memref<16x128xf32, #tpu.memory_space<vmem>> -> memref<1x128xf32, #tpu.memory_space<vmem>>
    %151 = tpu.memref_slice %arg5[%c9_i32_109] : memref<16x!tpu.dma_semaphore, #tpu.memory_space<semaphore_mem>> -> memref<1x!tpu.dma_semaphore, #tpu.memory_space<semaphore_mem>>
    %152 = tpu.memref_squeeze %151 : memref<1x!tpu.dma_semaphore, #tpu.memory_space<semaphore_mem>> -> memref<!tpu.dma_semaphore, #tpu.memory_space<semaphore_mem>>
    tpu.wait_dma2 semaphore(%152 : memref<!tpu.dma_semaphore, #tpu.memory_space<semaphore_mem>>) src(%149 : memref<1x128xf32, #tpu.memory_space<any>>) dst(%150 : memref<1x128xf32, #tpu.memory_space<vmem>>)
    %c10_i32_114 = arith.constant 10 : i32
    %c0_i32_115 = arith.constant 0 : i32
    %c0_i32_116 = arith.constant 0 : i32
    %153 = tpu.memref_slice %arg2[%c0_i32_115, %c0_i32_116] : memref<32x128xf32, #tpu.memory_space<any>> -> memref<1x128xf32, #tpu.memory_space<any>>
    %c10_i32_117 = arith.constant 10 : i32
    %c0_i32_118 = arith.constant 0 : i32
    %154 = tpu.memref_slice %arg4[%c10_i32_117, %c0_i32_118] : memref<16x128xf32, #tpu.memory_space<vmem>> -> memref<1x128xf32, #tpu.memory_space<vmem>>
    %155 = tpu.memref_slice %arg5[%c10_i32_114] : memref<16x!tpu.dma_semaphore, #tpu.memory_space<semaphore_mem>> -> memref<1x!tpu.dma_semaphore, #tpu.memory_space<semaphore_mem>>
    %156 = tpu.memref_squeeze %155 : memref<1x!tpu.dma_semaphore, #tpu.memory_space<semaphore_mem>> -> memref<!tpu.dma_semaphore, #tpu.memory_space<semaphore_mem>>
    tpu.wait_dma2 semaphore(%156 : memref<!tpu.dma_semaphore, #tpu.memory_space<semaphore_mem>>) src(%153 : memref<1x128xf32, #tpu.memory_space<any>>) dst(%154 : memref<1x128xf32, #tpu.memory_space<vmem>>)
    %c11_i32_119 = arith.constant 11 : i32
    %c0_i32_120 = arith.constant 0 : i32
    %c0_i32_121 = arith.constant 0 : i32
    %157 = tpu.memref_slice %arg2[%c0_i32_120, %c0_i32_121] : memref<32x128xf32, #tpu.memory_space<any>> -> memref<1x128xf32, #tpu.memory_space<any>>
    %c11_i32_122 = arith.constant 11 : i32
    %c0_i32_123 = arith.constant 0 : i32
    %158 = tpu.memref_slice %arg4[%c11_i32_122, %c0_i32_123] : memref<16x128xf32, #tpu.memory_space<vmem>> -> memref<1x128xf32, #tpu.memory_space<vmem>>
    %159 = tpu.memref_slice %arg5[%c11_i32_119] : memref<16x!tpu.dma_semaphore, #tpu.memory_space<semaphore_mem>> -> memref<1x!tpu.dma_semaphore, #tpu.memory_space<semaphore_mem>>
    %160 = tpu.memref_squeeze %159 : memref<1x!tpu.dma_semaphore, #tpu.memory_space<semaphore_mem>> -> memref<!tpu.dma_semaphore, #tpu.memory_space<semaphore_mem>>
    tpu.wait_dma2 semaphore(%160 : memref<!tpu.dma_semaphore, #tpu.memory_space<semaphore_mem>>) src(%157 : memref<1x128xf32, #tpu.memory_space<any>>) dst(%158 : memref<1x128xf32, #tpu.memory_space<vmem>>)
    %c12_i32_124 = arith.constant 12 : i32
    %c0_i32_125 = arith.constant 0 : i32
    %c0_i32_126 = arith.constant 0 : i32
    %161 = tpu.memref_slice %arg2[%c0_i32_125, %c0_i32_126] : memref<32x128xf32, #tpu.memory_space<any>> -> memref<1x128xf32, #tpu.memory_space<any>>
    %c12_i32_127 = arith.constant 12 : i32
    %c0_i32_128 = arith.constant 0 : i32
    %162 = tpu.memref_slice %arg4[%c12_i32_127, %c0_i32_128] : memref<16x128xf32, #tpu.memory_space<vmem>> -> memref<1x128xf32, #tpu.memory_space<vmem>>
    %163 = tpu.memref_slice %arg5[%c12_i32_124] : memref<16x!tpu.dma_semaphore, #tpu.memory_space<semaphore_mem>> -> memref<1x!tpu.dma_semaphore, #tpu.memory_space<semaphore_mem>>
    %164 = tpu.memref_squeeze %163 : memref<1x!tpu.dma_semaphore, #tpu.memory_space<semaphore_mem>> -> memref<!tpu.dma_semaphore, #tpu.memory_space<semaphore_mem>>
    tpu.wait_dma2 semaphore(%164 : memref<!tpu.dma_semaphore, #tpu.memory_space<semaphore_mem>>) src(%161 : memref<1x128xf32, #tpu.memory_space<any>>) dst(%162 : memref<1x128xf32, #tpu.memory_space<vmem>>)
    %c13_i32_129 = arith.constant 13 : i32
    %c0_i32_130 = arith.constant 0 : i32
    %c0_i32_131 = arith.constant 0 : i32
    %165 = tpu.memref_slice %arg2[%c0_i32_130, %c0_i32_131] : memref<32x128xf32, #tpu.memory_space<any>> -> memref<1x128xf32, #tpu.memory_space<any>>
    %c13_i32_132 = arith.constant 13 : i32
    %c0_i32_133 = arith.constant 0 : i32
    %166 = tpu.memref_slice %arg4[%c13_i32_132, %c0_i32_133] : memref<16x128xf32, #tpu.memory_space<vmem>> -> memref<1x128xf32, #tpu.memory_space<vmem>>
    %167 = tpu.memref_slice %arg5[%c13_i32_129] : memref<16x!tpu.dma_semaphore, #tpu.memory_space<semaphore_mem>> -> memref<1x!tpu.dma_semaphore, #tpu.memory_space<semaphore_mem>>
    %168 = tpu.memref_squeeze %167 : memref<1x!tpu.dma_semaphore, #tpu.memory_space<semaphore_mem>> -> memref<!tpu.dma_semaphore, #tpu.memory_space<semaphore_mem>>
    tpu.wait_dma2 semaphore(%168 : memref<!tpu.dma_semaphore, #tpu.memory_space<semaphore_mem>>) src(%165 : memref<1x128xf32, #tpu.memory_space<any>>) dst(%166 : memref<1x128xf32, #tpu.memory_space<vmem>>)
    %c14_i32_134 = arith.constant 14 : i32
    %c0_i32_135 = arith.constant 0 : i32
    %c0_i32_136 = arith.constant 0 : i32
    %169 = tpu.memref_slice %arg2[%c0_i32_135, %c0_i32_136] : memref<32x128xf32, #tpu.memory_space<any>> -> memref<1x128xf32, #tpu.memory_space<any>>
    %c14_i32_137 = arith.constant 14 : i32
    %c0_i32_138 = arith.constant 0 : i32
    %170 = tpu.memref_slice %arg4[%c14_i32_137, %c0_i32_138] : memref<16x128xf32, #tpu.memory_space<vmem>> -> memref<1x128xf32, #tpu.memory_space<vmem>>
    %171 = tpu.memref_slice %arg5[%c14_i32_134] : memref<16x!tpu.dma_semaphore, #tpu.memory_space<semaphore_mem>> -> memref<1x!tpu.dma_semaphore, #tpu.memory_space<semaphore_mem>>
    %172 = tpu.memref_squeeze %171 : memref<1x!tpu.dma_semaphore, #tpu.memory_space<semaphore_mem>> -> memref<!tpu.dma_semaphore, #tpu.memory_space<semaphore_mem>>
    tpu.wait_dma2 semaphore(%172 : memref<!tpu.dma_semaphore, #tpu.memory_space<semaphore_mem>>) src(%169 : memref<1x128xf32, #tpu.memory_space<any>>) dst(%170 : memref<1x128xf32, #tpu.memory_space<vmem>>)
    %c15_i32_139 = arith.constant 15 : i32
    %c0_i32_140 = arith.constant 0 : i32
    %c0_i32_141 = arith.constant 0 : i32
    %173 = tpu.memref_slice %arg2[%c0_i32_140, %c0_i32_141] : memref<32x128xf32, #tpu.memory_space<any>> -> memref<1x128xf32, #tpu.memory_space<any>>
    %c15_i32_142 = arith.constant 15 : i32
    %c0_i32_143 = arith.constant 0 : i32
    %174 = tpu.memref_slice %arg4[%c15_i32_142, %c0_i32_143] : memref<16x128xf32, #tpu.memory_space<vmem>> -> memref<1x128xf32, #tpu.memory_space<vmem>>
    %175 = tpu.memref_slice %arg5[%c15_i32_139] : memref<16x!tpu.dma_semaphore, #tpu.memory_space<semaphore_mem>> -> memref<1x!tpu.dma_semaphore, #tpu.memory_space<semaphore_mem>>
    %176 = tpu.memref_squeeze %175 : memref<1x!tpu.dma_semaphore, #tpu.memory_space<semaphore_mem>> -> memref<!tpu.dma_semaphore, #tpu.memory_space<semaphore_mem>>
    tpu.wait_dma2 semaphore(%176 : memref<!tpu.dma_semaphore, #tpu.memory_space<semaphore_mem>>) src(%173 : memref<1x128xf32, #tpu.memory_space<any>>) dst(%174 : memref<1x128xf32, #tpu.memory_space<vmem>>)
    %c0 = arith.constant 0 : index
    %c0_144 = arith.constant 0 : index
    %177 = vector.load %arg4[%c0, %c0_144] : memref<16x128xf32, #tpu.memory_space<vmem>>, vector<16x128xf32>
    %c0_145 = arith.constant 0 : index
    %c0_146 = arith.constant 0 : index
    %178 = vector.load %arg3[%c0_145, %c0_146] : memref<16x128xf32, #tpu.memory_space<vmem>>, vector<16x128xf32>
    tpu.vector_store %arg3[%c0_145, %c0_146], %177 {strides = array<i32>} : memref<16x128xf32, #tpu.memory_space<vmem>>, vector<16x128xf32>,
    return
  }
  func.func @transform_1(%arg0: i32, %arg1: memref<16xi32, #tpu.memory_space<smem>>) -> (i32, i32) {
    %c0_i32 = arith.constant 0 : i32
    %c0_i32_0 = arith.constant 0 : i32
    return %arg0, %c0_i32 : i32, i32
  }
}

</mosaic_0001>

<bundles_post_ra>
// kernel: tpu_custom_call.1
= control target key start
LH: loop header
LB: loop body
LE: loop exit
PB: predicated region body
PF: predicated region fallthrough
CT: control target
= control target key end

     0   :  { %s1319_s0 = inlined_call_operand.hbm [shape: s32[16], index: 0, kind: input, shape index: {}]   ;;  %s1320_s1 = inlined_call_operand.hbm [shape: f32[32,128], index: 1, kind: input, shape index: {}]   ;;  %s1321_s2 = inlined_call_operand.hbm [shape: f32[16,128], index: 2, kind: output, shape index: {}]  }
   0x1   :  { %s545_s11 = scalar_lea.hbm %s1319_s0, 16 }
   0x2   :  { %p546_p0 = scmp.ne.s32.totalorder %s1319_s0, %s545_s11  ;;  %p549_p1 = scmp.lt.u32.totalorder %s545_s11, %s1319_s0 }
   0x4   :  { %p551_p2 = pnand %p549_p1, %p546_p0 }
   0x6   :  { %554 = shalt.err (!%p551_p2)  }
   0x7   :  { %s997_s16 = smov [#allocation5]  }
   0x8   :  { %8 = dma.hbm_to_smem %s1319_s0, 16, %s997_s16, [#allocation4] }
   0x9   :  { %961 = dma.done.wait [#allocation4], 16 }
   0xa   :  { %962 = vsyncadd [#allocation4], 4294967280 }
   0xb   :  { %10 = sfence }
   0xc   :  { %11 = vsyncpa [#allocation7], 0  ;;  %s13_s19 = sld [smem:[#allocation5]]  ;;  %s998_s20 = smov [#allocation2]  }
   0xd   :  { %s23_s21 = sshll.u32 %s998_s20, 4  ;;  %s1044_s22 = sld [smem:[#allocation5 + $0x1]]  ;;  %s1046_s21 = int_to_ptr.vmem [resolvable:$true] %s23_s21 }
   0xe   :  { %s999_s23 = smov [#allocation2 + $0x1]   ;;  %s1048_s25 = sld [smem:[#allocation5 + $0x2]] }
   0xf   :  { %s40_s24 = sshll.u32 %s999_s23, 4  ;;  %s1000_s26 = smov [#allocation2 + $0x2]   ;;  %s1050_s24 = int_to_ptr.vmem [resolvable:$true] %s40_s24 }
  0x10   :  { %s57_s0 = sshll.u32 %s1000_s26, 4  ;;  %s1052_s27 = sld [smem:[#allocation5 + $0x3]]  ;;  %s1054_s0 = int_to_ptr.vmem [resolvable:$true] %s57_s0 }
  0x11   :  { %s1063_s8 = scalar_lea.hbm %s1320_s1, 512 }
  0x12   :  { %s478_s28 = sshll.u32 %s13_s19, 4 }
  0x13   :  { %s15_s3 = scalar_lea.hbm %s1320_s1, %s478_s28  ;;  %s480_s4 = sshll.u32 %s1044_s22, 4 }
  0x14   :  { %s555_s5 = scalar_lea.hbm %s15_s3, 16  ;;  %p558_p4 = scmp.lt.u32.totalorder %s15_s3, %s1320_s1 }
  0x15   :  { %p556_p3 = scmp.ne.s32.totalorder %s15_s3, %s555_s5  ;;  %p559_p5 = scmp.lt.u32.totalorder %s1063_s8, %s555_s5 }
  0x16   :  { %p561_p7 = scmp.lt.u32.totalorder %s555_s5, %s15_s3 }
  0x17   :  { %p560_p6 = por %p559_p5, %p558_p4 }
  0x19   :  { %p562_p8 = por %p561_p7, %p560_p6 }
  0x1b   :  { %p563_p9 = pnand %p562_p8, %p556_p3 }
  0x1d   :  { %566 = shalt.err (!%p563_p9)  }
  0x1e   :  { %s567_s11 = scalar_lea.vmem %s1046_s21, 16  ;;  %s1072_s12 = scalar_lea.vmem %s1046_s21, 256 }
  0x1f   :  { %p568_p10 = scmp.ne.s32.totalorder %s1046_s21, %s567_s11  ;;  %p572_p11 = scmp.lt.s32.totalorder %s1046_s21, %s1046_s21 }
  0x20   :  { %p573_p12 = scmp.lt.s32.totalorder %s1072_s12, %s567_s11 }
  0x22   :  { %p574_p13 = por %p573_p12, %p572_p11 }
  0x24   :  { %p575_p0 = pnand %p574_p13, %p568_p10 }
  0x26   :  { %578 = shalt.err (!%p575_p0)  }
  0x27   :  { %26 = dma.hbm_to_vmem [thread:$0]  %s15_s3, 16, %s1046_s21, [#allocation3] }
  0x28   :  { %s30_s15 = scalar_lea.hbm %s1320_s1, %s480_s4  ;;  %s482_s16 = sshll.u32 %s1048_s25, 4 }
  0x29   :  { %s579_s17 = scalar_lea.hbm %s30_s15, 16  ;;  %p582_p2 = scmp.lt.u32.totalorder %s30_s15, %s1320_s1 }
  0x2a   :  { %p580_p1 = scmp.ne.s32.totalorder %s30_s15, %s579_s17  ;;  %p583_p3 = scmp.lt.u32.totalorder %s1063_s8, %s579_s17 }
  0x2b   :  { %p585_p5 = scmp.lt.u32.totalorder %s579_s17, %s30_s15 }
  0x2c   :  { %p584_p4 = por %p583_p3, %p582_p2 }
  0x2e   :  { %p586_p6 = por %p585_p5, %p584_p4 }
  0x30   :  { %p587_p7 = pnand %p586_p6, %p580_p1 }
  0x32   :  { %590 = shalt.err (!%p587_p7)  }
  0x33   :  { %s591_s20 = scalar_lea.vmem %s1050_s24, 16  ;;  %p596_p9 = scmp.lt.s32.totalorder %s1050_s24, %s1046_s21 }
  0x34   :  { %p592_p8 = scmp.ne.s32.totalorder %s1050_s24, %s591_s20  ;;  %p597_p10 = scmp.lt.s32.totalorder %s1072_s12, %s591_s20 }
  0x36   :  { %p598_p11 = por %p597_p10, %p596_p9 }
  0x38   :  { %p599_p12 = pnand %p598_p11, %p592_p8 }
  0x3a   :  { %602 = shalt.err (!%p599_p12)  }
  0x3b   :  { %43 = dma.hbm_to_vmem [thread:$0]  %s30_s15, 16, %s1050_s24, [#allocation3 + $0x1] }
  0x3c   :  { %s47_s25 = scalar_lea.hbm %s1320_s1, %s482_s16  ;;  %s484_s26 = sshll.u32 %s1052_s27, 4 }
  0x3d   :  { %s603_s28 = scalar_lea.hbm %s47_s25, 16  ;;  %p606_p0 = scmp.lt.u32.totalorder %s47_s25, %s1320_s1 }
  0x3e   :  { %p604_p13 = scmp.ne.s32.totalorder %s47_s25, %s603_s28  ;;  %p607_p1 = scmp.lt.u32.totalorder %s1063_s8, %s603_s28 }
  0x3f   :  { %p609_p3 = scmp.lt.u32.totalorder %s603_s28, %s47_s25 }
  0x40   :  { %p608_p2 = por %p607_p1, %p606_p0 }
  0x42   :  { %p610_p4 = por %p609_p3, %p608_p2 }
  0x44   :  { %p611_p5 = pnand %p610_p4, %p604_p13 }
  0x46   :  { %614 = shalt.err (!%p611_p5)  }
  0x47   :  { %s615_s24 = scalar_lea.vmem %s1054_s0, 16  ;;  %p620_p7 = scmp.lt.s32.totalorder %s1054_s0, %s1046_s21 }
  0x48   :  { %p616_p6 = scmp.ne.s32.totalorder %s1054_s0, %s615_s24  ;;  %p621_p8 = scmp.lt.s32.totalorder %s1072_s12, %s615_s24 }
  0x4a   :  { %p622_p9 = por %p621_p8, %p620_p7 }
  0x4c   :  { %p623_p10 = pnand %p622_p9, %p616_p6 }
  0x4e   :  { %626 = shalt.err (!%p623_p10)  }
  0x4f   :  { %60 = dma.hbm_to_vmem [thread:$0]  %s47_s25, 16, %s1054_s0, [#allocation3 + $0x2] }
  0x50   :  { %s64_s4 = scalar_lea.hbm %s1320_s1, %s484_s26  ;;  %s1001_s5 = smov [#allocation2 + $0x3]  }
  0x51   :  { %s74_s6 = sshll.u32 %s1001_s5, 4  ;;  %s1109_s7 = sld [smem:[#allocation5 + $0x4]]  ;;  %s75_s6 = int_to_ptr.vmem [resolvable:$true] %s74_s6 }
  0x52   :  { %s627_s9 = scalar_lea.hbm %s64_s4, 16  ;;  %p630_p12 = scmp.lt.u32.totalorder %s64_s4, %s1320_s1 }
  0x53   :  { %p628_p11 = scmp.ne.s32.totalorder %s64_s4, %s627_s9  ;;  %p631_p13 = scmp.lt.u32.totalorder %s1063_s8, %s627_s9 }
  0x54   :  { %p633_p1 = scmp.lt.u32.totalorder %s627_s9, %s64_s4 }
  0x55   :  { %p632_p0 = por %p631_p13, %p630_p12 }
  0x57   :  { %p634_p2 = por %p633_p1, %p632_p0 }
  0x59   :  { %p635_p3 = pnand %p634_p2, %p628_p11 }
  0x5b   :  { %638 = shalt.err (!%p635_p3)  }
  0x5c   :  { %s639_s0 = scalar_lea.vmem %s75_s6, 16  ;;  %p644_p5 = scmp.lt.s32.totalorder %s75_s6, %s1046_s21 }
  0x5d   :  { %p640_p4 = scmp.ne.s32.totalorder %s75_s6, %s639_s0  ;;  %p645_p6 = scmp.lt.s32.totalorder %s1072_s12, %s639_s0 }
  0x5f   :  { %p646_p7 = por %p645_p6, %p644_p5 }
  0x61   :  { %p647_p8 = pnand %p646_p7, %p640_p4 }
  0x63   :  { %650 = shalt.err (!%p647_p8)  }
  0x64   :  { %77 = dma.hbm_to_vmem [thread:$0]  %s64_s4, 16, %s75_s6, [#allocation3 + $0x3] }
  0x65   :  { %s1002_s13 = smov [#allocation2 + $0x4]   ;;  %s1117_s15 = sld [smem:[#allocation5 + $0x5]] }
  0x66   :  { %s91_s14 = sshll.u32 %s1002_s13, 4  ;;  %s1003_s16 = smov [#allocation2 + $0x5]   ;;  %s92_s14 = int_to_ptr.vmem [resolvable:$true] %s91_s14 }
  0x67   :  { %s108_s17 = sshll.u32 %s1003_s16, 4  ;;  %s1119_s18 = sld [smem:[#allocation5 + $0x6]]  ;;  %s1122_s17 = int_to_ptr.vmem [resolvable:$true] %s108_s17 }
  0x68   :  { %s486_s19 = sshll.u32 %s1109_s7, 4 }
  0x69   :  { %s81_s23 = scalar_lea.hbm %s1320_s1, %s486_s19 }
  0x6a   :  { %s651_s25 = scalar_lea.hbm %s81_s23, 16  ;;  %p654_p10 = scmp.lt.u32.totalorder %s81_s23, %s1320_s1 }
  0x6b   :  { %p652_p9 = scmp.ne.s32.totalorder %s81_s23, %s651_s25  ;;  %p655_p11 = scmp.lt.u32.totalorder %s1063_s8, %s651_s25 }
  0x6c   :  { %p657_p13 = scmp.lt.u32.totalorder %s651_s25, %s81_s23 }
  0x6d   :  { %p656_p12 = por %p655_p11, %p654_p10 }
  0x6f   :  { %p658_p0 = por %p657_p13, %p656_p12 }
  0x71   :  { %p659_p1 = pnand %p658_p0, %p652_p9 }
  0x73   :  { %662 = shalt.err (!%p659_p1)  }
  0x74   :  { %s663_s29 = scalar_lea.vmem %s92_s14, 16  ;;  %p668_p3 = scmp.lt.s32.totalorder %s92_s14, %s1046_s21 }
  0x75   :  { %p664_p2 = scmp.ne.s32.totalorder %s92_s14, %s663_s29  ;;  %p669_p4 = scmp.lt.s32.totalorder %s1072_s12, %s663_s29 }
  0x77   :  { %p670_p5 = por %p669_p4, %p668_p3 }
  0x79   :  { %p671_p6 = pnand %p670_p5, %p664_p2 }
  0x7b   :  { %674 = shalt.err (!%p671_p6)  }
  0x7c   :  { %94 = dma.hbm_to_vmem [thread:$0]  %s81_s23, 16, %s92_s14, [#allocation3 + $0x4] }
  0x7d   :  { %s488_s30 = sshll.u32 %s1117_s15, 4  ;;  %s1004_s24 = smov [#allocation2 + $0x6]  }
  0x7e   :  { %s125_s27 = sshll.u32 %s1004_s24, 4  ;;  %s98_s5 = scalar_lea.hbm %s1320_s1, %s488_s30  ;;  %s1137_s27 = int_to_ptr.vmem [resolvable:$true] %s125_s27 }
  0x7f   :  { %s675_s6 = scalar_lea.hbm %s98_s5, 16  ;;  %p678_p8 = scmp.lt.u32.totalorder %s98_s5, %s1320_s1 }
  0x80   :  { %p676_p7 = scmp.ne.s32.totalorder %s98_s5, %s675_s6  ;;  %p679_p9 = scmp.lt.u32.totalorder %s1063_s8, %s675_s6 }
  0x81   :  { %p681_p11 = scmp.lt.u32.totalorder %s675_s6, %s98_s5 }
  0x82   :  { %p680_p10 = por %p679_p9, %p678_p8 }
  0x84   :  { %p682_p12 = por %p681_p11, %p680_p10 }
  0x86   :  { %p683_p13 = pnand %p682_p12, %p676_p7 }
  0x88   :  { %686 = shalt.err (!%p683_p13)  }
  0x89   :  { %s687_s10 = scalar_lea.vmem %s1122_s17, 16  ;;  %p692_p1 = scmp.lt.s32.totalorder %s1122_s17, %s1046_s21 }
  0x8a   :  { %p688_p0 = scmp.ne.s32.totalorder %s1122_s17, %s687_s10  ;;  %p693_p2 = scmp.lt.s32.totalorder %s1072_s12, %s687_s10 }
  0x8c   :  { %p694_p3 = por %p693_p2, %p692_p1 }
  0x8e   :  { %p695_p4 = pnand %p694_p3, %p688_p0 }
  0x90   :  { %698 = shalt.err (!%p695_p4)  }
  0x91   :  { %111 = dma.hbm_to_vmem [thread:$0]  %s98_s5, 16, %s1122_s17, [#allocation3 + $0x5] }
  0x92   :  { %s490_s11 = sshll.u32 %s1119_s18, 4  ;;  %s1150_s0 = sld [smem:[#allocation5 + $0x7]] }
  0x93   :  { %s115_s15 = scalar_lea.hbm %s1320_s1, %s490_s11 }
  0x94   :  { %s699_s16 = scalar_lea.hbm %s115_s15, 16  ;;  %p702_p6 = scmp.lt.u32.totalorder %s115_s15, %s1320_s1 }
  0x95   :  { %p700_p5 = scmp.ne.s32.totalorder %s115_s15, %s699_s16  ;;  %p703_p7 = scmp.lt.u32.totalorder %s1063_s8, %s699_s16 }
  0x96   :  { %p705_p9 = scmp.lt.u32.totalorder %s699_s16, %s115_s15 }
  0x97   :  { %p704_p8 = por %p703_p7, %p702_p6 }
  0x99   :  { %p706_p10 = por %p705_p9, %p704_p8 }
  0x9b   :  { %p707_p11 = pnand %p706_p10, %p700_p5 }
  0x9d   :  { %710 = shalt.err (!%p707_p11)  }
  0x9e   :  { %s711_s17 = scalar_lea.vmem %s1137_s27, 16  ;;  %p716_p13 = scmp.lt.s32.totalorder %s1137_s27, %s1046_s21 }
  0x9f   :  { %p712_p12 = scmp.ne.s32.totalorder %s1137_s27, %s711_s17  ;;  %p717_p0 = scmp.lt.s32.totalorder %s1072_s12, %s711_s17 }
  0xa1   :  { %p718_p1 = por %p717_p0, %p716_p13 }
  0xa3   :  { %p719_p2 = pnand %p718_p1, %p712_p12 }
  0xa5   :  { %722 = shalt.err (!%p719_p2)  }
  0xa6   :  { %128 = dma.hbm_to_vmem [thread:$0]  %s115_s15, 16, %s1137_s27, [#allocation3 + $0x6] }
  0xa7   :  { %s1005_s18 = smov [#allocation2 + $0x7]   ;;  %s1165_s23 = sld [smem:[#allocation5 + $0x8]] }
  0xa8   :  { %s142_s22 = sshll.u32 %s1005_s18, 4  ;;  %s1006_s25 = smov [#allocation2 + $0x8]   ;;  %s143_s22 = int_to_ptr.vmem [resolvable:$true] %s142_s22 }
  0xa9   :  { %s159_s26 = sshll.u32 %s1006_s25, 4  ;;  %s1167_s28 = sld [smem:[#allocation5 + $0x9]]  ;;  %s1170_s26 = int_to_ptr.vmem [resolvable:$true] %s159_s26 }
  0xaa   :  { %s492_s29 = sshll.u32 %s1150_s0, 4 }
  0xab   :  { %s132_s3 = scalar_lea.hbm %s1320_s1, %s492_s29 }
  0xac   :  { %s723_s4 = scalar_lea.hbm %s132_s3, 16  ;;  %p726_p4 = scmp.lt.u32.totalorder %s132_s3, %s1320_s1 }
  0xad   :  { %p724_p3 = scmp.ne.s32.totalorder %s132_s3, %s723_s4  ;;  %p727_p5 = scmp.lt.u32.totalorder %s1063_s8, %s723_s4 }
  0xae   :  { %p729_p7 = scmp.lt.u32.totalorder %s723_s4, %s132_s3 }
  0xaf   :  { %p728_p6 = por %p727_p5, %p726_p4 }
  0xb1   :  { %p730_p8 = por %p729_p7, %p728_p6 }
  0xb3   :  { %p731_p9 = pnand %p730_p8, %p724_p3 }
  0xb5   :  { %734 = shalt.err (!%p731_p9)  }
  0xb6   :  { %s735_s6 = scalar_lea.vmem %s143_s22, 16  ;;  %p740_p11 = scmp.lt.s32.totalorder %s143_s22, %s1046_s21 }
  0xb7   :  { %p736_p10 = scmp.ne.s32.totalorder %s143_s22, %s735_s6  ;;  %p741_p12 = scmp.lt.s32.totalorder %s1072_s12, %s735_s6 }
  0xb9   :  { %p742_p13 = por %p741_p12, %p740_p11 }
  0xbb   :  { %p743_p0 = pnand %p742_p13, %p736_p10 }
  0xbd   :  { %746 = shalt.err (!%p743_p0)  }
  0xbe   :  { %145 = dma.hbm_to_vmem [thread:$0]  %s132_s3, 16, %s143_s22, [#allocation3 + $0x7] }
  0xbf   :  { %s494_s7 = sshll.u32 %s1165_s23, 4  ;;  %s1007_s9 = smov [#allocation2 + $0x9]  }
  0xc0   :  { %s176_s10 = sshll.u32 %s1007_s9, 4  ;;  %s149_s13 = scalar_lea.hbm %s1320_s1, %s494_s7  ;;  %s1185_s10 = int_to_ptr.vmem [resolvable:$true] %s176_s10 }
  0xc1   :  { %s747_s14 = scalar_lea.hbm %s149_s13, 16  ;;  %p750_p2 = scmp.lt.u32.totalorder %s149_s13, %s1320_s1 }
  0xc2   :  { %p748_p1 = scmp.ne.s32.totalorder %s149_s13, %s747_s14  ;;  %p751_p3 = scmp.lt.u32.totalorder %s1063_s8, %s747_s14 }
  0xc3   :  { %p753_p5 = scmp.lt.u32.totalorder %s747_s14, %s149_s13 }
  0xc4   :  { %p752_p4 = por %p751_p3, %p750_p2 }
  0xc6   :  { %p754_p6 = por %p753_p5, %p752_p4 }
  0xc8   :  { %p755_p7 = pnand %p754_p6, %p748_p1 }
  0xca   :  { %758 = shalt.err (!%p755_p7)  }
  0xcb   :  { %s759_s19 = scalar_lea.vmem %s1170_s26, 16  ;;  %p764_p9 = scmp.lt.s32.totalorder %s1170_s26, %s1046_s21 }
  0xcc   :  { %p760_p8 = scmp.ne.s32.totalorder %s1170_s26, %s759_s19  ;;  %p765_p10 = scmp.lt.s32.totalorder %s1072_s12, %s759_s19 }
  0xce   :  { %p766_p11 = por %p765_p10, %p764_p9 }
  0xd0   :  { %p767_p12 = pnand %p766_p11, %p760_p8 }
  0xd2   :  { %770 = shalt.err (!%p767_p12)  }
  0xd3   :  { %162 = dma.hbm_to_vmem [thread:$0]  %s149_s13, 16, %s1170_s26, [#allocation3 + $0x8] }
  0xd4   :  { %s496_s20 = sshll.u32 %s1167_s28, 4  ;;  %s1198_s17 = sld [smem:[#allocation5 + $0xa]] }
  0xd5   :  { %s166_s23 = scalar_lea.hbm %s1320_s1, %s496_s20 }
  0xd6   :  { %s771_s25 = scalar_lea.hbm %s166_s23, 16  ;;  %p774_p0 = scmp.lt.u32.totalorder %s166_s23, %s1320_s1 }
  0xd7   :  { %p772_p13 = scmp.ne.s32.totalorder %s166_s23, %s771_s25  ;;  %p775_p1 = scmp.lt.u32.totalorder %s1063_s8, %s771_s25 }
  0xd8   :  { %p777_p3 = scmp.lt.u32.totalorder %s771_s25, %s166_s23 }
  0xd9   :  { %p776_p2 = por %p775_p1, %p774_p0 }
  0xdb   :  { %p778_p4 = por %p777_p3, %p776_p2 }
  0xdd   :  { %p779_p5 = pnand %p778_p4, %p772_p13 }
  0xdf   :  { %782 = shalt.err (!%p779_p5)  }
  0xe0   :  { %s783_s26 = scalar_lea.vmem %s1185_s10, 16  ;;  %p788_p7 = scmp.lt.s32.totalorder %s1185_s10, %s1046_s21 }
  0xe1   :  { %p784_p6 = scmp.ne.s32.totalorder %s1185_s10, %s783_s26  ;;  %p789_p8 = scmp.lt.s32.totalorder %s1072_s12, %s783_s26 }
  0xe3   :  { %p790_p9 = por %p789_p8, %p788_p7 }
  0xe5   :  { %p791_p10 = pnand %p790_p9, %p784_p6 }
  0xe7   :  { %794 = shalt.err (!%p791_p10)  }
  0xe8   :  { %179 = dma.hbm_to_vmem [thread:$0]  %s166_s23, 16, %s1185_s10, [#allocation3 + $0x9] }
  0xe9   :  { %s1008_s28 = smov [#allocation2 + $0xa]   ;;  %s1213_s3 = sld [smem:[#allocation5 + $0xb]] }
  0xea   :  { %s193_s24 = sshll.u32 %s1008_s28, 4  ;;  %s1009_s4 = smov [#allocation2 + $0xb]   ;;  %s194_s24 = int_to_ptr.vmem [resolvable:$true] %s193_s24 }
  0xeb   :  { %s210_s5 = sshll.u32 %s1009_s4, 4  ;;  %s1215_s27 = sld [smem:[#allocation5 + $0xc]]  ;;  %s1218_s5 = int_to_ptr.vmem [resolvable:$true] %s210_s5 }
  0xec   :  { %s498_s6 = sshll.u32 %s1198_s17, 4 }
  0xed   :  { %s183_s11 = scalar_lea.hbm %s1320_s1, %s498_s6 }
  0xee   :  { %s795_s0 = scalar_lea.hbm %s183_s11, 16  ;;  %p798_p12 = scmp.lt.u32.totalorder %s183_s11, %s1320_s1 }
  0xef   :  { %p796_p11 = scmp.ne.s32.totalorder %s183_s11, %s795_s0  ;;  %p799_p13 = scmp.lt.u32.totalorder %s1063_s8, %s795_s0 }
  0xf0   :  { %p801_p1 = scmp.lt.u32.totalorder %s795_s0, %s183_s11 }
  0xf1   :  { %p800_p0 = por %p799_p13, %p798_p12 }
  0xf3   :  { %p802_p2 = por %p801_p1, %p800_p0 }
  0xf5   :  { %p803_p3 = pnand %p802_p2, %p796_p11 }
  0xf7   :  { %806 = shalt.err (!%p803_p3)  }
  0xf8   :  { %s807_s14 = scalar_lea.vmem %s194_s24, 16  ;;  %p812_p5 = scmp.lt.s32.totalorder %s194_s24, %s1046_s21 }
  0xf9   :  { %p808_p4 = scmp.ne.s32.totalorder %s194_s24, %s807_s14  ;;  %p813_p6 = scmp.lt.s32.totalorder %s1072_s12, %s807_s14 }
  0xfb   :  { %p814_p7 = por %p813_p6, %p812_p5 }
  0xfd   :  { %p815_p8 = pnand %p814_p7, %p808_p4 }
  0xff   :  { %818 = shalt.err (!%p815_p8)  }
 0x100   :  { %196 = dma.hbm_to_vmem [thread:$0]  %s183_s11, 16, %s194_s24, [#allocation3 + $0xa] }
 0x101   :  { %s500_s15 = sshll.u32 %s1213_s3, 4  ;;  %s1010_s16 = smov [#allocation2 + $0xc]  }
 0x102   :  { %s227_s19 = sshll.u32 %s1010_s16, 4  ;;  %s200_s18 = scalar_lea.hbm %s1320_s1, %s500_s15  ;;  %s1233_s19 = int_to_ptr.vmem [resolvable:$true] %s227_s19 }
 0x103   :  { %s819_s22 = scalar_lea.hbm %s200_s18, 16  ;;  %p822_p10 = scmp.lt.u32.totalorder %s200_s18, %s1320_s1 }
 0x104   :  { %p820_p9 = scmp.ne.s32.totalorder %s200_s18, %s819_s22  ;;  %p823_p11 = scmp.lt.u32.totalorder %s1063_s8, %s819_s22 }
 0x105   :  { %p825_p13 = scmp.lt.u32.totalorder %s819_s22, %s200_s18 }
 0x106   :  { %p824_p12 = por %p823_p11, %p822_p10 }
 0x108   :  { %p826_p0 = por %p825_p13, %p824_p12 }
 0x10a   :  { %p827_p1 = pnand %p826_p0, %p820_p9 }
 0x10c   :  { %830 = shalt.err (!%p827_p1)  }
 0x10d   :  { %s831_s29 = scalar_lea.vmem %s1218_s5, 16  ;;  %p836_p3 = scmp.lt.s32.totalorder %s1218_s5, %s1046_s21 }
 0x10e   :  { %p832_p2 = scmp.ne.s32.totalorder %s1218_s5, %s831_s29  ;;  %p837_p4 = scmp.lt.s32.totalorder %s1072_s12, %s831_s29 }
 0x110   :  { %p838_p5 = por %p837_p4, %p836_p3 }
 0x112   :  { %p839_p6 = pnand %p838_p5, %p832_p2 }
 0x114   :  { %842 = shalt.err (!%p839_p6)  }
 0x115   :  { %213 = dma.hbm_to_vmem [thread:$0]  %s200_s18, 16, %s1218_s5, [#allocation3 + $0xb] }
 0x116   :  { %s502_s30 = sshll.u32 %s1215_s27, 4  ;;  %s1246_s26 = sld [smem:[#allocation5 + $0xd]] }
 0x117   :  { %s217_s3 = scalar_lea.hbm %s1320_s1, %s502_s30 }
 0x118   :  { %s843_s4 = scalar_lea.hbm %s217_s3, 16  ;;  %p846_p8 = scmp.lt.u32.totalorder %s217_s3, %s1320_s1 }
 0x119   :  { %p844_p7 = scmp.ne.s32.totalorder %s217_s3, %s843_s4  ;;  %p847_p9 = scmp.lt.u32.totalorder %s1063_s8, %s843_s4 }
 0x11a   :  { %p849_p11 = scmp.lt.u32.totalorder %s843_s4, %s217_s3 }
 0x11b   :  { %p848_p10 = por %p847_p9, %p846_p8 }
 0x11d   :  { %p850_p12 = por %p849_p11, %p848_p10 }
 0x11f   :  { %p851_p13 = pnand %p850_p12, %p844_p7 }
 0x121   :  { %854 = shalt.err (!%p851_p13)  }
 0x122   :  { %s855_s5 = scalar_lea.vmem %s1233_s19, 16  ;;  %p860_p1 = scmp.lt.s32.totalorder %s1233_s19, %s1046_s21 }
 0x123   :  { %p856_p0 = scmp.ne.s32.totalorder %s1233_s19, %s855_s5  ;;  %p861_p2 = scmp.lt.s32.totalorder %s1072_s12, %s855_s5 }
 0x125   :  { %p862_p3 = por %p861_p2, %p860_p1 }
 0x127   :  { %p863_p4 = pnand %p862_p3, %p856_p0 }
 0x129   :  { %866 = shalt.err (!%p863_p4)  }
 0x12a   :  { %230 = dma.hbm_to_vmem [thread:$0]  %s217_s3, 16, %s1233_s19, [#allocation3 + $0xc] }
 0x12b   :  { %s1011_s27 = smov [#allocation2 + $0xd]   ;;  %s1261_s11 = sld [smem:[#allocation5 + $0xe]] }
 0x12c   :  { %s244_s9 = sshll.u32 %s1011_s27, 4  ;;  %s1012_s0 = smov [#allocation2 + $0xe]   ;;  %s245_s9 = int_to_ptr.vmem [resolvable:$true] %s244_s9 }
 0x12d   :  { %s261_s13 = sshll.u32 %s1012_s0, 4  ;;  %s1263_s10 = sld [smem:[#allocation5 + $0xf]]  ;;  %s1266_s13 = int_to_ptr.vmem [resolvable:$true] %s261_s13 }
 0x12e   :  { %s504_s14 = sshll.u32 %s1246_s26, 4 }
 0x12f   :  { %s234_s20 = scalar_lea.hbm %s1320_s1, %s504_s14 }
 0x130   :  { %s867_s17 = scalar_lea.hbm %s234_s20, 16  ;;  %p870_p6 = scmp.lt.u32.totalorder %s234_s20, %s1320_s1 }
 0x131   :  { %p868_p5 = scmp.ne.s32.totalorder %s234_s20, %s867_s17  ;;  %p871_p7 = scmp.lt.u32.totalorder %s1063_s8, %s867_s17 }
 0x132   :  { %p873_p9 = scmp.lt.u32.totalorder %s867_s17, %s234_s20 }
 0x133   :  { %p872_p8 = por %p871_p7, %p870_p6 }
 0x135   :  { %p874_p10 = por %p873_p9, %p872_p8 }
 0x137   :  { %p875_p11 = pnand %p874_p10, %p868_p5 }
 0x139   :  { %878 = shalt.err (!%p875_p11)  }
 0x13a   :  { %s879_s22 = scalar_lea.vmem %s245_s9, 16  ;;  %p884_p13 = scmp.lt.s32.totalorder %s245_s9, %s1046_s21 }
 0x13b   :  { %p880_p12 = scmp.ne.s32.totalorder %s245_s9, %s879_s22  ;;  %p885_p0 = scmp.lt.s32.totalorder %s1072_s12, %s879_s22 }
 0x13d   :  { %p886_p1 = por %p885_p0, %p884_p13 }
 0x13f   :  { %p887_p2 = pnand %p886_p1, %p880_p12 }
 0x141   :  { %890 = shalt.err (!%p887_p2)  }
 0x142   :  { %247 = dma.hbm_to_vmem [thread:$0]  %s234_s20, 16, %s245_s9, [#allocation3 + $0xd] }
 0x143   :  { %s506_s23 = sshll.u32 %s1261_s11, 4  ;;  %s1013_s25 = smov [#allocation2 + $0xf]  }
 0x144   :  { %s278_s29 = sshll.u32 %s1013_s25, 4  ;;  %s251_s28 = scalar_lea.hbm %s1320_s1, %s506_s23  ;;  %s1281_s29 = int_to_ptr.vmem [resolvable:$true] %s278_s29 }
 0x145   :  { %s891_s24 = scalar_lea.hbm %s251_s28, 16  ;;  %p894_p4 = scmp.lt.u32.totalorder %s251_s28, %s1320_s1 }
 0x146   :  { %p892_p3 = scmp.ne.s32.totalorder %s251_s28, %s891_s24  ;;  %p895_p5 = scmp.lt.u32.totalorder %s1063_s8, %s891_s24 }
 0x147   :  { %p897_p7 = scmp.lt.u32.totalorder %s891_s24, %s251_s28 }
 0x148   :  { %p896_p6 = por %p895_p5, %p894_p4 }
 0x14a   :  { %p898_p8 = por %p897_p7, %p896_p6 }
 0x14c   :  { %p899_p9 = pnand %p898_p8, %p892_p3 }
 0x14e   :  { %902 = shalt.err (!%p899_p9)  }
 0x14f   :  { %s903_s6 = scalar_lea.vmem %s1266_s13, 16  ;;  %p908_p11 = scmp.lt.s32.totalorder %s1266_s13, %s1046_s21 }
 0x150   :  { %p904_p10 = scmp.ne.s32.totalorder %s1266_s13, %s903_s6  ;;  %p909_p12 = scmp.lt.s32.totalorder %s1072_s12, %s903_s6 }
 0x152   :  { %p910_p13 = por %p909_p12, %p908_p11 }
 0x154   :  { %p911_p0 = pnand %p910_p13, %p904_p10 }
 0x156   :  { %914 = shalt.err (!%p911_p0)  }
 0x157   :  { %264 = dma.hbm_to_vmem [thread:$0]  %s251_s28, 16, %s1266_s13, [#allocation3 + $0xe] }
 0x158   :  { %s508_s7 = sshll.u32 %s1263_s10, 4 }
 0x159   :  { %s268_s9 = scalar_lea.hbm %s1320_s1, %s508_s7 }
 0x15a   :  { %s915_s11 = scalar_lea.hbm %s268_s9, 16  ;;  %p918_p2 = scmp.lt.u32.totalorder %s268_s9, %s1320_s1 }
 0x15b   :  { %p916_p1 = scmp.ne.s32.totalorder %s268_s9, %s915_s11  ;;  %p919_p3 = scmp.lt.u32.totalorder %s1063_s8, %s915_s11 }
 0x15c   :  { %p921_p5 = scmp.lt.u32.totalorder %s915_s11, %s268_s9 }
 0x15d   :  { %p920_p4 = por %p919_p3, %p918_p2 }
 0x15f   :  { %p922_p6 = por %p921_p5, %p920_p4 }
 0x161   :  { %p923_p7 = pnand %p922_p6, %p916_p1 }
 0x163   :  { %926 = shalt.err (!%p923_p7)  }
 0x164   :  { %s927_s13 = scalar_lea.vmem %s1281_s29, 16  ;;  %p932_p9 = scmp.lt.s32.totalorder %s1281_s29, %s1046_s21 }
 0x165   :  { %p928_p8 = scmp.ne.s32.totalorder %s1281_s29, %s927_s13  ;;  %p933_p10 = scmp.lt.s32.totalorder %s1072_s12, %s927_s13 }
 0x167   :  { %p934_p11 = por %p933_p10, %p932_p9 }
 0x169   :  { %p935_p12 = pnand %p934_p11, %p928_p8 }
 0x16b   :  { %938 = shalt.err (!%p935_p12)  }
 0x16c   :  { %281 = dma.hbm_to_vmem [thread:$0]  %s268_s9, 16, %s1281_s29, [#allocation3 + $0xf] }
 0x16d   :  { %963 = dma.done.wait [#allocation3], 16 }
 0x16e   :  { %964 = vsyncadd [#allocation3], 4294967280 }
 0x16f   :  { %965 = dma.done.wait [#allocation3 + $0x1], 16 }
 0x170   :  { %966 = vsyncadd [#allocation3 + $0x1], 4294967280 }
 0x171   :  { %967 = dma.done.wait [#allocation3 + $0x2], 16 }
 0x172   :  { %968 = vsyncadd [#allocation3 + $0x2], 4294967280 }
 0x173   :  { %969 = dma.done.wait [#allocation3 + $0x3], 16 }
 0x174   :  { %970 = vsyncadd [#allocation3 + $0x3], 4294967280 }
 0x175   :  { %971 = dma.done.wait [#allocation3 + $0x4], 16 }
 0x176   :  { %972 = vsyncadd [#allocation3 + $0x4], 4294967280 }
 0x177   :  { %973 = dma.done.wait [#allocation3 + $0x5], 16 }
 0x178   :  { %974 = vsyncadd [#allocation3 + $0x5], 4294967280 }
 0x179   :  { %975 = dma.done.wait [#allocation3 + $0x6], 16 }
 0x17a   :  { %976 = vsyncadd [#allocation3 + $0x6], 4294967280 }
 0x17b   :  { %977 = dma.done.wait [#allocation3 + $0x7], 16 }
 0x17c   :  { %978 = vsyncadd [#allocation3 + $0x7], 4294967280 }
 0x17d   :  { %979 = dma.done.wait [#allocation3 + $0x8], 16 }
 0x17e   :  { %980 = vsyncadd [#allocation3 + $0x8], 4294967280 }
 0x17f   :  { %981 = dma.done.wait [#allocation3 + $0x9], 16 }
 0x180   :  { %982 = vsyncadd [#allocation3 + $0x9], 4294967280 }
 0x181   :  { %983 = dma.done.wait [#allocation3 + $0xa], 16 }
 0x182   :  { %984 = vsyncadd [#allocation3 + $0xa], 4294967280 }
 0x183   :  { %985 = dma.done.wait [#allocation3 + $0xb], 16 }
 0x184   :  { %986 = vsyncadd [#allocation3 + $0xb], 4294967280 }
 0x185   :  { %987 = dma.done.wait [#allocation3 + $0xc], 16 }
 0x186   :  { %988 = vsyncadd [#allocation3 + $0xc], 4294967280 }
 0x187   :  { %989 = dma.done.wait [#allocation3 + $0xd], 16 }
 0x188   :  { %990 = vsyncadd [#allocation3 + $0xd], 4294967280 }
 0x189   :  { %991 = dma.done.wait [#allocation3 + $0xe], 16 }
 0x18a   :  { %992 = vsyncadd [#allocation3 + $0xe], 4294967280 }
 0x18b   :  { %993 = dma.done.wait [#allocation3 + $0xf], 16 }
 0x18c   :  { %994 = vsyncadd [#allocation3 + $0xf], 4294967280  ;;  %s1014_s1 = smov [#allocation6]   ;;  %v315_v0 = vld [vmem:[#allocation2] sm:$0xff]  ;;  %v316_v1 = vld [vmem:[#allocation2 + $0x8] sm:$0xff] }
 0x18d   :  { %s324_s21 = sshll.u32 %s1014_s1, 4  ;;  %317 = vst [vmem:[#allocation6] sm:$0xff] %v315_v0  ;;  %318 = vst [vmem:[#allocation6 + $0x8] sm:$0xff] %v316_v1  ;;  %s325_s21 = int_to_ptr.vmem [resolvable:$true] %s324_s21 }
 0x18e   :  { %s939_s8 = scalar_lea.vmem %s325_s21, 256  ;;  %p944_p0 = scmp.lt.s32.totalorder %s325_s21, %s325_s21 }
 0x18f   :  { %p940_p13 = scmp.ne.s32.totalorder %s325_s21, %s939_s8  ;;  %p945_p1 = scmp.lt.s32.totalorder %s939_s8, %s939_s8 }
 0x191   :  { %p946_p2 = por %p945_p1, %p944_p0 }
 0x193   :  { %p947_p3 = pnand %p946_p2, %p940_p13 }
 0x195   :  { %950 = shalt.err (!%p947_p3)
}
 0x196   :  { %s951_s15 = scalar_lea.hbm %s1321_s2, 256 }
 0x197   :  { %p952_p4 = scmp.ne.s32.totalorder %s1321_s2, %s951_s15  ;;  %p955_p5 = scmp.lt.u32.totalorder %s951_s15, %s1321_s2 }
 0x199   :  { %p957_p6 = pnand %p955_p5, %p952_p4 }
 0x19b   :  { %960 = shalt.err (!%p957_p6)
}
 0x19c   :  { %s1015_s19 = smov 128   ;;  %s1016_s22 = smov 8  }
 0x19d   :  { %330 = dma.vmem_to_hbm [thread:$0]  %s325_s21, 256, %s1321_s2, [#allocation7], %s1015_s19, %s1015_s19, %s1016_s22  }
 0x19e   :  { %995 = dma.done.wait [#allocation7], 256  }
 0x19f   :  { %996 = vsyncadd [#allocation7], 4294967040 }
 0x1a0   :  { %334 = vsyncpa [#allocation7], 1 }
 0x1a1   :  { %335 = vsyncmov [#allocation3] }
 0x1a4   :  { %s336_s29 = vpop.sfrf %335 }
 0x1a5   :  { %p509_p7 = scmp.ne.s32.totalorder %s336_s29, 0 }
 0x1a7   :  { %340 = shalt.err (%p509_p7)  }
 0x1a8   :  { %342 = vsyncmov [#allocation3 + $0x1] }
 0x1ab   :  { %s343_s30 = vpop.sfrf %342 }
 0x1ac   :  { %p510_p8 = scmp.ne.s32.totalorder %s343_s30, 0 }
 0x1ae   :  { %347 = shalt.err (%p510_p8)  }
 0x1af   :  { %349 = vsyncmov [#allocation3 + $0x2] }
 0x1b2   :  { %s350_s26 = vpop.sfrf %349 }
 0x1b3   :  { %p511_p9 = scmp.ne.s32.totalorder %s350_s26, 0 }
 0x1b5   :  { %354 = shalt.err (%p511_p9)  }
 0x1b6   :  { %356 = vsyncmov [#allocation3 + $0x3] }
 0x1b9   :  { %s357_s28 = vpop.sfrf %356 }
 0x1ba   :  { %p512_p10 = scmp.ne.s32.totalorder %s357_s28, 0 }
 0x1bc   :  { %361 = shalt.err (%p512_p10)  }
 0x1bd   :  { %363 = vsyncmov [#allocation3 + $0x4] }
 0x1c0   :  { %s364_s2 = vpop.sfrf %363 }
 0x1c1   :  { %p513_p11 = scmp.ne.s32.totalorder %s364_s2, 0 }
 0x1c3   :  { %368 = shalt.err (%p513_p11)  }
 0x1c4   :  { %370 = vsyncmov [#allocation3 + $0x5] }
 0x1c7   :  { %s371_s24 = vpop.sfrf %370 }
 0x1c8   :  { %p514_p12 = scmp.ne.s32.totalorder %s371_s24, 0 }
 0x1ca   :  { %375 = shalt.err (%p514_p12)  }
 0x1cb   :  { %377 = vsyncmov [#allocation3 + $0x6] }
 0x1ce   :  { %s378_s3 = vpop.sfrf %377 }
 0x1cf   :  { %p515_p13 = scmp.ne.s32.totalorder %s378_s3, 0 }
 0x1d1   :  { %382 = shalt.err (%p515_p13)  }
 0x1d2   :  { %384 = vsyncmov [#allocation3 + $0x7] }
 0x1d5   :  { %s385_s4 = vpop.sfrf %384 }
 0x1d6   :  { %p516_p0 = scmp.ne.s32.totalorder %s385_s4, 0 }
 0x1d8   :  { %389 = shalt.err (%p516_p0)  }
 0x1d9   :  { %391 = vsyncmov [#allocation3 + $0x8] }
 0x1dc   :  { %s392_s6 = vpop.sfrf %391 }
 0x1dd   :  { %p517_p1 = scmp.ne.s32.totalorder %s392_s6, 0 }
 0x1df   :  { %396 = shalt.err (%p517_p1)  }
 0x1e0   :  { %398 = vsyncmov [#allocation3 + $0x9] }
 0x1e3   :  { %s399_s7 = vpop.sfrf %398 }
 0x1e4   :  { %p518_p2 = scmp.ne.s32.totalorder %s399_s7, 0 }
 0x1e6   :  { %403 = shalt.err (%p518_p2)  }
 0x1e7   :  { %405 = vsyncmov [#allocation3 + $0xa] }
 0x1ea   :  { %s406_s5 = vpop.sfrf %405 }
 0x1eb   :  { %p519_p3 = scmp.ne.s32.totalorder %s406_s5, 0 }
 0x1ed   :  { %410 = shalt.err (%p519_p3)  }
 0x1ee   :  { %412 = vsyncmov [#allocation3 + $0xb] }
 0x1f1   :  { %s413_s27 = vpop.sfrf %412 }
 0x1f2   :  { %p520_p4 = scmp.ne.s32.totalorder %s413_s27, 0 }
 0x1f4   :  { %417 = shalt.err (%p520_p4)  }
 0x1f5   :  { %419 = vsyncmov [#allocation3 + $0xc] }
 0x1f8   :  { %s420_s9 = vpop.sfrf %419 }
 0x1f9   :  { %p521_p5 = scmp.ne.s32.totalorder %s420_s9, 0 }
 0x1fb   :  { %424 = shalt.err (%p521_p5)  }
 0x1fc   :  { %426 = vsyncmov [#allocation3 + $0xd] }
 0x1ff   :  { %s427_s11 = vpop.sfrf %426 }
 0x200   :  { %p522_p6 = scmp.ne.s32.totalorder %s427_s11, 0 }
 0x202   :  { %431 = shalt.err (%p522_p6)  }
 0x203   :  { %433 = vsyncmov [#allocation3 + $0xe] }
 0x206   :  { %s434_s0 = vpop.sfrf %433 }
 0x207   :  { %p523_p7 = scmp.ne.s32.totalorder %s434_s0, 0 }
 0x209   :  { %438 = shalt.err (%p523_p7)  }
 0x20a   :  { %440 = vsyncmov [#allocation3 + $0xf] }
 0x20d   :  { %s441_s14 = vpop.sfrf %440 }
 0x20e   :  { %p524_p8 = scmp.ne.s32.totalorder %s441_s14, 0 }
 0x210   :  { %445 = shalt.err (%p524_p8)  }

</bundles_post_ra>
